<compile_context>
chip_gen: v6e
topology: v6e:2x2x1
jax: 0.10.0
libtpu: 0.0.40
codegen_flags: <defaults>
</compile_context>

<pallas_src>
import functools

import jax
import jax.numpy as jnp
from jax import lax
from jax.experimental import pallas as pl
from jax.experimental.pallas import tpu as pltpu

FEAT = 256     # CNN feature width / fc output width
HIDDEN = 30    # LSTM hidden size (logical)
G = 128        # per-gate lane stride in the padded gate layout (aligned lane slices)


# ---------------------------------------------------------------------------
# Fused kernel: per-image global-average-pool partial sums every grid step,
# CNN head + LSTM + fc + MSE on the last grid step.
# ---------------------------------------------------------------------------
def gru_kernel(x_ref, w_cnn_ref, b_cnn_ref, w_ih_ref, w_hh_ref, b_lstm_ref,
               w_fc_ref, b_fc_ref, loss_ref, pooled_s, gx_s, h_s, *,
               inv_spatial):
    i = pl.program_id(0)
    n = pooled_s.shape[0]

    # ---- every step: pool image i (sum only; divide by the true count later).
    # Sublane reduce first (VPU adds), then one small lane reduce (XLU).  Masked
    # reductions respect the logical 299x299 extent, so no zero-padding is needed.
    col = jnp.sum(x_ref[...], axis=2)                     # (1, C, W)
    pooled_s[pl.ds(i, 1), :] = jnp.sum(col, axis=2)       # (1, C)

    # ---- last step: CNN head + LSTM + fc + MSE (tiny, fully VMEM-resident).
    @pl.when(i == pl.num_programs(0) - 1)
    def _head():
        pooled = pooled_s[...] * inv_spatial              # (N, C) true mean

        # stand-in CNN head: C -> 256  (this is `target`)
        feats = jnp.dot(pooled, w_cnn_ref[...],
                        preferred_element_type=jnp.float32) + b_cnn_ref[...]

        # nn.LSTM(256, 30, batch_first=True) on target.view(1, -1, 256).
        # Input-to-hidden projection hoisted out of the serial recurrence as one
        # batched matmul; gate axis is padded to a 128-lane stride so per-step
        # gate extraction is an aligned lane slice.
        gx_s[...] = jnp.dot(feats, w_ih_ref[...],
                            preferred_element_type=jnp.float32) + b_lstm_ref[...]

        h0 = jnp.zeros((1, G), jnp.float32)
        c0 = jnp.zeros((1, G), jnp.float32)

        def step(t, carry):
            h, c = carry
            # (1,128)@(128,512): inherently serial; w_hh stays VMEM-resident.
            gates = gx_s[pl.ds(t, 1), :] + jnp.dot(
                h, w_hh_ref[...], preferred_element_type=jnp.float32)   # (1, 4G)
            # packed gate order [i, f, o, g]: one sigmoid over 3*G lanes, one tanh.
            sig = jax.nn.sigmoid(gates[:, :3 * G])
            g_g = jnp.tanh(gates[:, 3 * G:])
            c = sig[:, G:2 * G] * c + sig[:, :G] * g_g
            h = sig[:, 2 * G:3 * G] * jnp.tanh(c)
            h_s[pl.ds(t, 1), :] = h
            return (h, c)

        # Static trip count, fully unrolled: dynamic indices become static and the
        # LLO scheduler can overlap EUP / VPU / MXU work across steps.
        lax.fori_loop(0, n, step, (h0, c0), unroll=True)

        # ReLU, view(-1, 30), fc = Linear(30, 256) + ReLU.  Padded hidden lanes
        # (30..127) stay exactly zero through the recurrence and hit zero rows of
        # the padded w_fc, so padding never leaks into the result.
        h_all = jnp.maximum(h_s[...], 0.0)                               # (N, 128)
        out = jnp.dot(h_all, w_fc_ref[...],
                      preferred_element_type=jnp.float32) + b_fc_ref[...]
        out = jnp.maximum(out, 0.0)

        # MSELoss(h, target.squeeze()): mean over all N*256 elements.
        diff = out - feats
        loss_ref[...] = jnp.mean(diff * diff)[None, None]


# ---------------------------------------------------------------------------
# Parameters (logical PyTorch-like layout) + packing into the kernel layout.
# ---------------------------------------------------------------------------
def init_params(key):
    ks = jax.random.split(key, 7)
    s = 0.05
    return {
        # CNN stand-in: 3 -> 256
        "w_cnn": s * jax.random.normal(ks[0], (3, FEAT), jnp.float32),
        "b_cnn": s * jax.random.normal(ks[1], (1, FEAT), jnp.float32),
        # LSTM weights, logical gate order [i, f, g, o] like PyTorch (stored transposed).
        "w_ih": s * jax.random.normal(ks[2], (FEAT, 4 * HIDDEN), jnp.float32),
        "w_hh": s * jax.random.normal(ks[3], (HIDDEN, 4 * HIDDEN), jnp.float32),
        # combined bias  b_ih + b_hh
        "b_lstm": s * jax.random.normal(ks[4], (1, 4 * HIDDEN), jnp.float32),
        # fc: 30 -> 256
        "w_fc": s * jax.random.normal(ks[5], (HIDDEN, FEAT), jnp.float32),
        "b_fc": s * jax.random.normal(ks[6], (1, FEAT), jnp.float32),
    }


def _pack_lstm(params):
    """Zero-pad LSTM / fc weights into the 128-per-gate lane layout and reorder the
    gates from logical [i, f, g, o] to packed [i, f, o, g] so sigmoid covers one
    contiguous slice.  Padded positions are zero, so the math is unchanged."""
    h, g = HIDDEN, G
    perm = (0, 1, 3, 2)   # logical gate k in [i, f, g, o] -> packed slot perm[k]
    w_ih_p = jnp.zeros((FEAT, 4 * g), jnp.float32)
    w_hh_p = jnp.zeros((g, 4 * g), jnp.float32)
    b_p = jnp.zeros((1, 4 * g), jnp.float32)
    for k, slot in enumerate(perm):
        w_ih_p = w_ih_p.at[:, slot * g:slot * g + h].set(params["w_ih"][:, k * h:(k + 1) * h])
        w_hh_p = w_hh_p.at[:h, slot * g:slot * g + h].set(params["w_hh"][:, k * h:(k + 1) * h])
        b_p = b_p.at[:, slot * g:slot * g + h].set(params["b_lstm"][:, k * h:(k + 1) * h])
    w_fc_p = jnp.zeros((g, FEAT), jnp.float32).at[:h, :].set(params["w_fc"])
    return w_ih_p, w_hh_p, b_p, w_fc_p


# ---------------------------------------------------------------------------
# Wrapper
# ---------------------------------------------------------------------------
def gru_forward(x, params):
    """x: any shape viewable as (-1, 3, 299, 299) float32.  Returns the scalar MSE loss."""
    x = x.reshape(-1, 3, 299, 299)                # mirrors input.view(-1, 3, 299, 299)
    n, c, hh, ww = x.shape
    spatial = hh * ww                             # true element count (89401)

    w_ih_p, w_hh_p, b_p, w_fc_p = _pack_lstm(params)

    def const_spec(shape):
        # full-extent block, constant index map -> DMA'd into VMEM exactly once.
        return pl.BlockSpec(shape, lambda i, _s=shape: tuple(0 for _ in _s))

    loss = pl.pallas_call(
        functools.partial(gru_kernel, inv_spatial=1.0 / spatial),
        out_shape=jax.ShapeDtypeStruct((1, 1), jnp.float32),
        grid=(n,),
        in_specs=[
            # whole image per grid step; block == full array dims on the last two axes.
            pl.BlockSpec((1, c, hh, ww), lambda i: (i, 0, 0, 0)),
            const_spec(params["w_cnn"].shape),
            const_spec(params["b_cnn"].shape),
            const_spec(w_ih_p.shape),
            const_spec(w_hh_p.shape),
            const_spec(b_p.shape),
            const_spec(w_fc_p.shape),
            const_spec(params["b_fc"].shape),
        ],
        out_specs=pl.BlockSpec((1, 1), lambda i: (0, 0)),
        scratch_shapes=[
            pltpu.VMEM((n, c), jnp.float32),        # per-image pooled sums
            pltpu.VMEM((n, 4 * G), jnp.float32),    # hoisted gate x-projection
            pltpu.VMEM((n, G), jnp.float32),        # per-step hidden states
        ],
        compiler_params=pltpu.CompilerParams(
            # cross-step scratch + last-step head => the image axis is a dependency chain.
            dimension_semantics=("arbitrary",),
            # ~5 MiB actual (2.8 MiB image double-buffer + <2 MiB weights) + headroom.
            vmem_limit_bytes=12 * 1024 * 1024),
    )(x, params["w_cnn"], params["b_cnn"], w_ih_p, w_hh_p, b_p, w_fc_p,
      params["b_fc"])
    return loss[0, 0]


if __name__ == "__main__":
    key = jax.random.PRNGKey(0)
    k_x, k_p = jax.random.split(key)

    # forward() views the input to (-1, 3, 299, 299); use batch = 2.
    x = jax.random.normal(k_x, (2, 3, 299, 299), jnp.float32)
    params = init_params(k_p)

    loss = jax.block_until_ready(jax.jit(gru_forward)(x, params))
    assert loss.shape == () and jnp.isfinite(loss)
    print("KERNEL_OK")
</pallas_src>

<mosaic_0001>
module attributes {stable_mosaic.version = 11 : i64} {
  func.func @gru_kernel(%arg0: i32, %arg1: memref<1x3x299x299xf32, #tpu.memory_space<vmem>>, %arg2: memref<3x256xf32, #tpu.memory_space<vmem>>, %arg3: memref<1x256xf32, #tpu.memory_space<vmem>>, %arg4: memref<256x512xf32, #tpu.memory_space<vmem>>, %arg5: memref<128x512xf32, #tpu.memory_space<vmem>>, %arg6: memref<1x512xf32, #tpu.memory_space<vmem>>, %arg7: memref<128x256xf32, #tpu.memory_space<vmem>>, %arg8: memref<1x256xf32, #tpu.memory_space<vmem>>, %arg9: memref<1x1xf32, #tpu.memory_space<vmem>>, %arg10: memref<2x3xf32, #tpu.memory_space<vmem>>, %arg11: memref<2x512xf32, #tpu.memory_space<vmem>>, %arg12: memref<2x128xf32, #tpu.memory_space<vmem>>) attributes {dimension_semantics = [#tpu.dimension_semantics<arbitrary>], iteration_bounds = array<i64: 2>, scalar_prefetch = 0 : i64, scratch_operands = 3 : i64, tpu.core_type = #tpu.core_type<tc>, window_params = [{transform_indices = @transform_0, window_bounds = array<i64: 1, 3, 299, 299>}, {pipeline_mode = #tpu.pipeline_mode<synchronous>, transform_indices = @transform_1, window_bounds = array<i64: 3, 256>}, {pipeline_mode = #tpu.pipeline_mode<synchronous>, transform_indices = @transform_2, window_bounds = array<i64: 1, 256>}, {pipeline_mode = #tpu.pipeline_mode<synchronous>, transform_indices = @transform_3, window_bounds = array<i64: 256, 512>}, {pipeline_mode = #tpu.pipeline_mode<synchronous>, transform_indices = @transform_4, window_bounds = array<i64: 128, 512>}, {pipeline_mode = #tpu.pipeline_mode<synchronous>, transform_indices = @transform_5, window_bounds = array<i64: 1, 512>}, {pipeline_mode = #tpu.pipeline_mode<synchronous>, transform_indices = @transform_6, window_bounds = array<i64: 128, 256>}, {pipeline_mode = #tpu.pipeline_mode<synchronous>, transform_indices = @transform_7, window_bounds = array<i64: 1, 256>}, {pipeline_mode = #tpu.pipeline_mode<synchronous>, transform_indices = @transform_8, window_bounds = array<i64: 1, 1>}]} {
    %c0 = arith.constant 0 : index
    %c0_0 = arith.constant 0 : index
    %c0_1 = arith.constant 0 : index
    %c0_2 = arith.constant 0 : index
    %0 = vector.load %arg1[%c0, %c0_0, %c0_1, %c0_2] : memref<1x3x299x299xf32, #tpu.memory_space<vmem>>, vector<1x3x299x299xf32>
    %cst = arith.constant dense<0.000000e+00> : vector<1x3x299xf32>
    %1 = vector.multi_reduction <add>, %0, %cst [2] : vector<1x3x299x299xf32> to vector<1x3x299xf32>
    %cst_3 = arith.constant dense<0.000000e+00> : vector<1x3xf32>
    %2 = vector.multi_reduction <add>, %1, %cst_3 [2] : vector<1x3x299xf32> to vector<1x3xf32>
    %3 = arith.index_cast %arg0 : i32 to index
    %c0_4 = arith.constant 0 : index
    %4 = vector.load %arg10[%3, %c0_4] : memref<2x3xf32, #tpu.memory_space<vmem>>, vector<1x3xf32>
    tpu.vector_store %arg10[%3, %c0_4], %2 {strides = array<i32>} : memref<2x3xf32, #tpu.memory_space<vmem>>, vector<1x3xf32>,
    %c1_i32 = arith.constant 1 : i32
    %5 = arith.cmpi eq, %arg0, %c1_i32 : i32
    %6 = arith.extui %5 : i1 to i32
    %c0_i32 = arith.constant 0 : i32
    %7 = arith.cmpi ne, %6, %c0_i32 : i32
    scf.if %7 {
      %c0_5 = arith.constant 0 : index
      %c0_6 = arith.constant 0 : index
      %8 = vector.load %arg10[%c0_5, %c0_6] : memref<2x3xf32, #tpu.memory_space<vmem>>, vector<2x3xf32>
      %cst_7 = arith.constant 1.1185557E-5 : f32
      %9 = vector.broadcast %cst_7 : f32 to vector<2x3xf32>
      %10 = arith.mulf %8, %9 : vector<2x3xf32>
      %c0_8 = arith.constant 0 : index
      %c0_9 = arith.constant 0 : index
      %11 = vector.load %arg2[%c0_8, %c0_9] : memref<3x256xf32, #tpu.memory_space<vmem>>, vector<3x256xf32>
      %cst_10 = arith.constant dense<0.000000e+00> : vector<2x256xf32>
      %12 = tpu.matmul %10, %11, %cst_10 {dimension_numbers = #tpu.dot_dimension_numbers<[1], [0], [0], [1], [0, 0, 1, 1], [], []>} : vector<2x3xf32>, vector<3x256xf32>, vector<2x256xf32> -> vector<2x256xf32>
      %c0_11 = arith.constant 0 : index
      %c0_12 = arith.constant 0 : index
      %13 = vector.load %arg3[%c0_11, %c0_12] : memref<1x256xf32, #tpu.memory_space<vmem>>, vector<1x256xf32>
      %14 = vector.broadcast %13 : vector<1x256xf32> to vector<2x256xf32>
      %15 = arith.addf %12, %14 : vector<2x256xf32>
      %c0_13 = arith.constant 0 : index
      %c0_14 = arith.constant 0 : index
      %16 = vector.load %arg4[%c0_13, %c0_14] : memref<256x512xf32, #tpu.memory_space<vmem>>, vector<256x512xf32>
      %cst_15 = arith.constant dense<0.000000e+00> : vector<2x512xf32>
      %17 = tpu.matmul %15, %16, %cst_15 {dimension_numbers = #tpu.dot_dimension_numbers<[1], [0], [0], [1], [0, 0, 1, 1], [], []>} : vector<2x256xf32>, vector<256x512xf32>, vector<2x512xf32> -> vector<2x512xf32>
      %c0_16 = arith.constant 0 : index
      %c0_17 = arith.constant 0 : index
      %18 = vector.load %arg6[%c0_16, %c0_17] : memref<1x512xf32, #tpu.memory_space<vmem>>, vector<1x512xf32>
      %19 = vector.broadcast %18 : vector<1x512xf32> to vector<2x512xf32>
      %20 = arith.addf %17, %19 : vector<2x512xf32>
      %c0_18 = arith.constant 0 : index
      %c0_19 = arith.constant 0 : index
      %21 = vector.load %arg11[%c0_18, %c0_19] : memref<2x512xf32, #tpu.memory_space<vmem>>, vector<2x512xf32>
      tpu.vector_store %arg11[%c0_18, %c0_19], %20 {strides = array<i32>} : memref<2x512xf32, #tpu.memory_space<vmem>>, vector<2x512xf32>,
      %cst_20 = arith.constant 0.000000e+00 : f32
      %22 = vector.broadcast %cst_20 : f32 to vector<1x128xf32>
      %cst_21 = arith.constant 0.000000e+00 : f32
      %23 = vector.broadcast %cst_21 : f32 to vector<1x128xf32>
      %c0_i32_22 = arith.constant 0 : i32
      %24 = arith.index_cast %c0_i32_22 : i32 to index
      %c0_23 = arith.constant 0 : index
      %25 = vector.load %arg11[%24, %c0_23] : memref<2x512xf32, #tpu.memory_space<vmem>>, vector<1x512xf32>
      %c0_24 = arith.constant 0 : index
      %c0_25 = arith.constant 0 : index
      %26 = vector.load %arg5[%c0_24, %c0_25] : memref<128x512xf32, #tpu.memory_space<vmem>>, vector<128x512xf32>
      %cst_26 = arith.constant dense<0.000000e+00> : vector<1x512xf32>
      %27 = tpu.matmul %22, %26, %cst_26 {dimension_numbers = #tpu.dot_dimension_numbers<[1], [0], [0], [1], [0, 0, 1, 1], [], []>} : vector<1x128xf32>, vector<128x512xf32>, vector<1x512xf32> -> vector<1x512xf32>
      %28 = arith.addf %25, %27 : vector<1x512xf32>
      %29 = vector.extract_strided_slice %28 {offsets = [0, 0], sizes = [1, 384], strides = [1, 1]} : vector<1x512xf32> to vector<1x384xf32>
      %30 = arith.negf %29 : vector<1x384xf32>
      %31 = math.exp %30 : vector<1x384xf32>
      %cst_27 = arith.constant 1.000000e+00 : f32
      %32 = vector.broadcast %cst_27 : f32 to vector<1x384xf32>
      %33 = arith.addf %32, %31 : vector<1x384xf32>
      %34 = arith.divf %32, %33 : vector<1x384xf32>
      %35 = vector.extract_strided_slice %28 {offsets = [0, 384], sizes = [1, 128], strides = [1, 1]} : vector<1x512xf32> to vector<1x128xf32>
      %36 = math.tanh %35 : vector<1x128xf32>
      %37 = vector.extract_strided_slice %34 {offsets = [0, 128], sizes = [1, 128], strides = [1, 1]} : vector<1x384xf32> to vector<1x128xf32>
      %38 = arith.mulf %37, %23 : vector<1x128xf32>
      %39 = vector.extract_strided_slice %34 {offsets = [0, 0], sizes = [1, 128], strides = [1, 1]} : vector<1x384xf32> to vector<1x128xf32>
      %40 = arith.mulf %39, %36 : vector<1x128xf32>
      %41 = arith.addf %38, %40 : vector<1x128xf32>
      %42 = vector.extract_strided_slice %34 {offsets = [0, 256], sizes = [1, 128], strides = [1, 1]} : vector<1x384xf32> to vector<1x128xf32>
      %43 = math.tanh %41 : vector<1x128xf32>
      %44 = arith.mulf %42, %43 : vector<1x128xf32>
      %45 = arith.index_cast %c0_i32_22 : i32 to index
      %c0_28 = arith.constant 0 : index
      %46 = vector.load %arg12[%45, %c0_28] : memref<2x128xf32, #tpu.memory_space<vmem>>, vector<1x128xf32>
      tpu.vector_store %arg12[%45, %c0_28], %44 {strides = array<i32>} : memref<2x128xf32, #tpu.memory_space<vmem>>, vector<1x128xf32>,
      %c1_i32_29 = arith.constant 1 : i32
      %47 = arith.index_cast %c1_i32_29 : i32 to index
      %c0_30 = arith.constant 0 : index
      %48 = vector.load %arg11[%47, %c0_30] : memref<2x512xf32, #tpu.memory_space<vmem>>, vector<1x512xf32>
      %c0_31 = arith.constant 0 : index
      %c0_32 = arith.constant 0 : index
      %49 = vector.load %arg5[%c0_31, %c0_32] : memref<128x512xf32, #tpu.memory_space<vmem>>, vector<128x512xf32>
      %cst_33 = arith.constant dense<0.000000e+00> : vector<1x512xf32>
      %50 = tpu.matmul %44, %49, %cst_33 {dimension_numbers = #tpu.dot_dimension_numbers<[1], [0], [0], [1], [0, 0, 1, 1], [], []>} : vector<1x128xf32>, vector<128x512xf32>, vector<1x512xf32> -> vector<1x512xf32>
      %51 = arith.addf %48, %50 : vector<1x512xf32>
      %52 = vector.extract_strided_slice %51 {offsets = [0, 0], sizes = [1, 384], strides = [1, 1]} : vector<1x512xf32> to vector<1x384xf32>
      %53 = arith.negf %52 : vector<1x384xf32>
      %54 = math.exp %53 : vector<1x384xf32>
      %cst_34 = arith.constant 1.000000e+00 : f32
      %55 = vector.broadcast %cst_34 : f32 to vector<1x384xf32>
      %56 = arith.addf %55, %54 : vector<1x384xf32>
      %57 = arith.divf %55, %56 : vector<1x384xf32>
      %58 = vector.extract_strided_slice %51 {offsets = [0, 384], sizes = [1, 128], strides = [1, 1]} : vector<1x512xf32> to vector<1x128xf32>
      %59 = math.tanh %58 : vector<1x128xf32>
      %60 = vector.extract_strided_slice %57 {offsets = [0, 128], sizes = [1, 128], strides = [1, 1]} : vector<1x384xf32> to vector<1x128xf32>
      %61 = arith.mulf %60, %41 : vector<1x128xf32>
      %62 = vector.extract_strided_slice %57 {offsets = [0, 0], sizes = [1, 128], strides = [1, 1]} : vector<1x384xf32> to vector<1x128xf32>
      %63 = arith.mulf %62, %59 : vector<1x128xf32>
      %64 = arith.addf %61, %63 : vector<1x128xf32>
      %65 = vector.extract_strided_slice %57 {offsets = [0, 256], sizes = [1, 128], strides = [1, 1]} : vector<1x384xf32> to vector<1x128xf32>
      %66 = math.tanh %64 : vector<1x128xf32>
      %67 = arith.mulf %65, %66 : vector<1x128xf32>
      %68 = arith.index_cast %c1_i32_29 : i32 to index
      %c0_35 = arith.constant 0 : index
      %69 = vector.load %arg12[%68, %c0_35] : memref<2x128xf32, #tpu.memory_space<vmem>>, vector<1x128xf32>
      tpu.vector_store %arg12[%68, %c0_35], %67 {strides = array<i32>} : memref<2x128xf32, #tpu.memory_space<vmem>>, vector<1x128xf32>,
      %c2_i32 = arith.constant 2 : i32
      %c0_36 = arith.constant 0 : index
      %c0_37 = arith.constant 0 : index
      %70 = vector.load %arg12[%c0_36, %c0_37] : memref<2x128xf32, #tpu.memory_space<vmem>>, vector<2x128xf32>
      %cst_38 = arith.constant 0.000000e+00 : f32
      %71 = vector.broadcast %cst_38 : f32 to vector<2x128xf32>
      %72 = arith.maximumf %70, %71 : vector<2x128xf32>
      %c0_39 = arith.constant 0 : index
      %c0_40 = arith.constant 0 : index
      %73 = vector.load %arg7[%c0_39, %c0_40] : memref<128x256xf32, #tpu.memory_space<vmem>>, vector<128x256xf32>
      %cst_41 = arith.constant dense<0.000000e+00> : vector<2x256xf32>
      %74 = tpu.matmul %72, %73, %cst_41 {dimension_numbers = #tpu.dot_dimension_numbers<[1], [0], [0], [1], [0, 0, 1, 1], [], []>} : vector<2x128xf32>, vector<128x256xf32>, vector<2x256xf32> -> vector<2x256xf32>
      %c0_42 = arith.constant 0 : index
      %c0_43 = arith.constant 0 : index
      %75 = vector.load %arg8[%c0_42, %c0_43] : memref<1x256xf32, #tpu.memory_space<vmem>>, vector<1x256xf32>
      %76 = vector.broadcast %75 : vector<1x256xf32> to vector<2x256xf32>
      %77 = arith.addf %74, %76 : vector<2x256xf32>
      %cst_44 = arith.constant 0.000000e+00 : f32
      %78 = vector.broadcast %cst_44 : f32 to vector<2x256xf32>
      %79 = arith.maximumf %77, %78 : vector<2x256xf32>
      %80 = arith.subf %79, %15 : vector<2x256xf32>
      %81 = arith.mulf %80, %80 : vector<2x256xf32>
      %82 = vector.shape_cast %81 : vector<2x256xf32> to vector<1x2x256xf32>
      %cst_45 = arith.constant dense<0.000000e+00> : vector<1xf32>
      %83 = vector.multi_reduction <add>, %82, %cst_45 [1, 2] : vector<1x2x256xf32> to vector<1xf32>
      %84 = vector.shape_cast %83 : vector<1xf32> to vector<1x1x1xf32>
      %85 = vector.extract %84[0, 0, 0] : f32 from vector<1x1x1xf32>
      %cst_46 = arith.constant 5.120000e+02 : f32
      %86 = arith.divf %85, %cst_46 : f32
      %87 = vector.broadcast %86 : f32 to vector<1x1xf32>
      %c0_47 = arith.constant 0 : index
      %c0_48 = arith.constant 0 : index
      %88 = vector.load %arg9[%c0_47, %c0_48] : memref<1x1xf32, #tpu.memory_space<vmem>>, vector<1x1xf32>
      tpu.vector_store %arg9[%c0_47, %c0_48], %87 {strides = array<i32>} : memref<1x1xf32, #tpu.memory_space<vmem>>, vector<1x1xf32>,
    } else {
    }
    return
  }
  func.func @transform_0(%arg0: i32) -> (i32, i32, i32, i32) {
    %c0_i32 = arith.constant 0 : i32
    %c0_i32_0 = arith.constant 0 : i32
    %c0_i32_1 = arith.constant 0 : i32
    %c0_i32_2 = arith.constant 0 : i32
    return %arg0, %c0_i32, %c0_i32_0, %c0_i32_1 : i32, i32, i32, i32
  }
  func.func @transform_1(%arg0: i32) -> (i32, i32) {
    %c0_i32 = arith.constant 0 : i32
    %c0_i32_0 = arith.constant 0 : i32
    %c0_i32_1 = arith.constant 0 : i32
    return %c0_i32, %c0_i32_0 : i32, i32
  }
  func.func @transform_2(%arg0: i32) -> (i32, i32) {
    %c0_i32 = arith.constant 0 : i32
    %c0_i32_0 = arith.constant 0 : i32
    %c0_i32_1 = arith.constant 0 : i32
    return %c0_i32, %c0_i32_0 : i32, i32
  }
  func.func @transform_3(%arg0: i32) -> (i32, i32) {
    %c0_i32 = arith.constant 0 : i32
    %c0_i32_0 = arith.constant 0 : i32
    %c0_i32_1 = arith.constant 0 : i32
    return %c0_i32, %c0_i32_0 : i32, i32
  }
  func.func @transform_4(%arg0: i32) -> (i32, i32) {
    %c0_i32 = arith.constant 0 : i32
    %c0_i32_0 = arith.constant 0 : i32
    %c0_i32_1 = arith.constant 0 : i32
    return %c0_i32, %c0_i32_0 : i32, i32
  }
  func.func @transform_5(%arg0: i32) -> (i32, i32) {
    %c0_i32 = arith.constant 0 : i32
    %c0_i32_0 = arith.constant 0 : i32
    %c0_i32_1 = arith.constant 0 : i32
    return %c0_i32, %c0_i32_0 : i32, i32
  }
  func.func @transform_6(%arg0: i32) -> (i32, i32) {
    %c0_i32 = arith.constant 0 : i32
    %c0_i32_0 = arith.constant 0 : i32
    %c0_i32_1 = arith.constant 0 : i32
    return %c0_i32, %c0_i32_0 : i32, i32
  }
  func.func @transform_7(%arg0: i32) -> (i32, i32) {
    %c0_i32 = arith.constant 0 : i32
    %c0_i32_0 = arith.constant 0 : i32
    %c0_i32_1 = arith.constant 0 : i32
    return %c0_i32, %c0_i32_0 : i32, i32
  }
  func.func @transform_8(%arg0: i32) -> (i32, i32) {
    %c0_i32 = arith.constant 0 : i32
    %c0_i32_0 = arith.constant 0 : i32
    %c0_i32_1 = arith.constant 0 : i32
    return %c0_i32, %c0_i32_0 : i32, i32
  }
}

</mosaic_0001>

<bundles_post_ra>
// kernel: gru_forward.1
= control target key start
LH: loop header
LB: loop body
LE: loop exit
PB: predicated region body
PF: predicated region fallthrough
CT: control target
= control target key end

     0   :  { %13 = vsyncpa [#allocation6], 0  ;;  %s2445_s27 = smov 0   ;;  %s3983_s0 = inlined_call_operand.vmem [shape: f32[2,3,299,299], index: 0, kind: input, shape index: {}]   ;;  %s3984_s1 = inlined_call_operand.vmem [shape: f32[3,256], index: 1, kind: input, shape index: {}]   ;;  %s3985_s2 = inlined_call_operand.vmem [shape: f32[1,256], index: 2, kind: input, shape index: {}]   ;;  %s3986_s3 = inlined_call_operand.vmem [shape: f32[256,512], index: 3, kind: input, shape index: {}]   ;;  %s3987_s4 = inlined_call_operand.vmem [shape: f32[128,512], index: 4, kind: input, shape index: {}]   ;;  %s3988_s5 = inlined_call_operand.vmem [shape: f32[1,512], index: 5, kind: input, shape index: {}]   ;;  %s3989_s6 = inlined_call_operand.vmem [shape: f32[128,256], index: 6, kind: input, shape index: {}]   ;;  %s3990_s7 = inlined_call_operand.vmem [shape: f32[1,256], index: 7, kind: input, shape index: {}]   ;;  %s3991_s8 = inlined_call_operand.hbm [shape: f32[1,1], index: 8, kind: output, shape index: {}]  }
   0x1 LB: > { %s2451_s28 = sadd.s32 4294967295, %s2394_s27   ;;  %p2306_p0 = scmp.ge.s32.totalorder %s2394_s27, 1  ;;  %s2394_s27 = sphi %s2445_s27, %s19_s27  }
   0x2   : > { %p258_p1 = scmp.lt.s32.totalorder %s2394_s27, 3 }
   0x4   : > { %p259_p2 = pnand %p2306_p0, %p258_p1 }
   0x6   : > { %262 = sbr.rel (%p259_p2) target bundleno = 1505 (0x5e1), region = 52 }
   0xb   : > { %p287_p3 = scmp.lt.s32.totalorder %s2451_s28, 1  ;;  %vm723_vm0 = vcmask 351232   ;;  %vm670_vm1 = vcmask 1042432   ;;  %vm797_vm2 = vcmask 346112   ;;  %vm1153_vm3 = vcmask 1041409   ;;  %s2319_s12 = scalar_lea.vmem [#allocation2], %s2394_s27 }
   0xc   : > { %vm1155_vm4 = vcmask 1042434   ;;  %vm1180_vm5 = vcmask 16384   ;;  %p2309_p4 = scmp.ne.s32.totalorder %s2451_s28, 1 }
   0xd   : > { %s288_s29 = scalar_select %p287_p3, %s2451_s28, 1 }
   0xf   : > { %s2322_s30 = smul.u32 2736, %s288_s29 }
  0x11   : > { %s2460_s11 = scalar_lea.vmem %s3983_s0, %s2322_s30 }
  0x12   : > { %v292_v0 = vld [vmem:[%s2460_s11] sm:$0xff]  ;;  %v293_v1 = vld [vmem:[%s2460_s11 + $0x8] sm:$0xff]  ;;  %v294_v2 = vld [vmem:[%s2460_s11 + $0x10] sm:$0xff] }
  0x13   : > { %v295_v3 = vld [vmem:[%s2460_s11 + $0x18] sm:$0xff]  ;;  %v296_v4 = vld [vmem:[%s2460_s11 + $0x20] sm:$0xff]  ;;  %v297_v5 = vld [vmem:[%s2460_s11 + $0x28] sm:$0xff]  ;;  %v724_v6 = vsel %vm723_vm0, %v294_v2, 0.0 }
  0x14   : > { %v298_v7 = vld [vmem:[%s2460_s11 + $0x30] sm:$0xff]  ;;  %v299_v8 = vld [vmem:[%s2460_s11 + $0x38] sm:$0xff]  ;;  %v300_v9 = vld [vmem:[%s2460_s11 + $0x40] sm:$0xff]  ;;  %v634_v10 = vadd.f32 %v295_v3, %v292_v0  ;;  %v679_v11 = vadd.f32 %v296_v4, %v293_v1  ;;  %v725_v12 = vsel %vm723_vm0, %v297_v5, 0.0 }
  0x15   : > { %v301_v13 = vld [vmem:[%s2460_s11 + $0x48] sm:$0xff]  ;;  %v302_v14 = vld [vmem:[%s2460_s11 + $0x50] sm:$0xff]  ;;  %v303_v15 = vld [vmem:[%s2460_s11 + $0x58] sm:$0xff]  ;;  %v726_v16 = vadd.f32 %v725_v12, %v724_v6  ;;  %v727_v17 = vsel %vm723_vm0, %v300_v9, 0.0 }
  0x16   : > { %v306_v18 = vld [vmem:[%s2460_s11 + $0x70] sm:$0xff]  ;;  %v635_v19 = vadd.f32 %v634_v10, %v298_v7  ;;  %v680_v20 = vadd.f32 %v679_v11, %v299_v8  ;;  %v729_v21 = vsel %vm723_vm0, %v303_v15, 0.0  ;;  %v304_v22 = vld [vmem:[%s2460_s11 + $0x60] sm:$0xff]  ;;  %v305_v23 = vld [vmem:[%s2460_s11 + $0x68] sm:$0xff] }
  0x17   : > { %v309_v24 = vld [vmem:[%s2460_s11 + $0x88] sm:$0xff]  ;;  %v728_v25 = vadd.f32 %v727_v17, %v726_v16  ;;  %v731_v28 = vsel %vm723_vm0, %v306_v18, 0.0  ;;  %v307_v29 = vld [vmem:[%s2460_s11 + $0x78] sm:$0xff]  ;;  %v308_v30 = vld [vmem:[%s2460_s11 + $0x80] sm:$0xff] }
  0x18   : > { %v636_v26 = vadd.f32 %v635_v19, %v301_v13  ;;  %v681_v27 = vadd.f32 %v680_v20, %v302_v14  ;;  %v312_v31 = vld [vmem:[%s2460_s11 + $0xa0] sm:$0xff]  ;;  %v733_v35 = vsel %vm723_vm0, %v309_v24, 0.0  ;;  %v310_v36 = vld [vmem:[%s2460_s11 + $0x90] sm:$0xff]  ;;  %v311_v37 = vld [vmem:[%s2460_s11 + $0x98] sm:$0xff] }
  0x19   : > { %v730_v32 = vadd.f32 %v729_v21, %v728_v25  ;;  %v315_v38 = vld [vmem:[%s2460_s11 + $0xb8] sm:$0xff]  ;;  %v735_v42 = vsel %vm723_vm0, %v312_v31, 0.0  ;;  %v313_v43 = vld [vmem:[%s2460_s11 + $0xa8] sm:$0xff]  ;;  %v314_v44 = vld [vmem:[%s2460_s11 + $0xb0] sm:$0xff] }
  0x1a   : > { %v637_v33 = vadd.f32 %v636_v26, %v304_v22  ;;  %v682_v34 = vadd.f32 %v681_v27, %v305_v23  ;;  %v737_v48 = vsel %vm723_vm0, %v315_v38, 0.0  ;;  %v318_v49 = vld [vmem:[%s2460_s11 + $0xd0] sm:$0xff]  ;;  %v316_v51 = vld [vmem:[%s2460_s11 + $0xc0] sm:$0xff]  ;;  %v317_v54 = vld [vmem:[%s2460_s11 + $0xc8] sm:$0xff] }
  0x1b   : > { %v732_v39 = vadd.f32 %v731_v28, %v730_v32  ;;  %v739_v56 = vsel %vm723_vm0, %v318_v49, 0.0  ;;  %v321_v57 = vld [vmem:[%s2460_s11 + $0xe8] sm:$0xff]  ;;  %v319_v59 = vld [vmem:[%s2460_s11 + $0xd8] sm:$0xff]  ;;  %v320_v61 = vld [vmem:[%s2460_s11 + $0xe0] sm:$0xff] }
  0x1c   : > { %v638_v40 = vadd.f32 %v637_v33, %v307_v29  ;;  %v683_v41 = vadd.f32 %v682_v34, %v308_v30  ;;  %v741_v63 = vsel %vm723_vm0, %v321_v57, 0.0  ;;  %v324_v0 = vld [vmem:[%s2460_s11 + $0x100] sm:$0xff]  ;;  %v322_v2 = vld [vmem:[%s2460_s11 + $0xf0] sm:$0xff]  ;;  %v323_v4 = vld [vmem:[%s2460_s11 + $0xf8] sm:$0xff] }
  0x1d   : > { %v734_v45 = vadd.f32 %v733_v35, %v732_v39  ;;  %v743_v6 = vsel %vm723_vm0, %v324_v0, 0.0  ;;  %v327_v7 = vld [vmem:[%s2460_s11 + $0x118] sm:$0xff]  ;;  %v325_v9 = vld [vmem:[%s2460_s11 + $0x108] sm:$0xff]  ;;  %v326_v11 = vld [vmem:[%s2460_s11 + $0x110] sm:$0xff] }
  0x1e   : > { %v639_v46 = vadd.f32 %v638_v40, %v310_v36  ;;  %v684_v47 = vadd.f32 %v683_v41, %v311_v37  ;;  %v745_v13 = vsel %vm723_vm0, %v327_v7, 0.0  ;;  %v330_v14 = vld [vmem:[%s2460_s11 + $0x130] sm:$0xff]  ;;  %v328_v16 = vld [vmem:[%s2460_s11 + $0x120] sm:$0xff]  ;;  %v329_v18 = vld [vmem:[%s2460_s11 + $0x128] sm:$0xff] }
  0x1f   : > { %v736_v50 = vadd.f32 %v735_v42, %v734_v45  ;;  %v747_v20 = vsel %vm723_vm0, %v330_v14, 0.0  ;;  %v333_v21 = vld [vmem:[%s2460_s11 + $0x148] sm:$0xff]  ;;  %v331_v23 = vld [vmem:[%s2460_s11 + $0x138] sm:$0xff]  ;;  %v332_v25 = vld [vmem:[%s2460_s11 + $0x140] sm:$0xff] }
  0x20   : > { %v640_v52 = vadd.f32 %v639_v46, %v313_v43  ;;  %v685_v53 = vadd.f32 %v684_v47, %v314_v44  ;;  %v749_v27 = vsel %vm723_vm0, %v333_v21, 0.0  ;;  %v334_v28 = vld [vmem:[%s2460_s11 + $0x150] sm:$0xff]  ;;  %v335_v29 = vld [vmem:[%s2460_s11 + $0x158] sm:$0xff]  ;;  %v336_v30 = vld [vmem:[%s2460_s11 + $0x160] sm:$0xff] }
  0x21   : > { %v738_v55 = vadd.f32 %v737_v48, %v736_v50  ;;  %v406_v32 = vld [vmem:[%s2460_s11 + $0x390] sm:$0xff]  ;;  %v407_v33 = vld [vmem:[%s2460_s11 + $0x398] sm:$0xff]  ;;  %v408_v34 = vld [vmem:[%s2460_s11 + $0x3a0] sm:$0xff]  ;;  %v751_v44 = vsel %vm723_vm0, %v336_v30, 0.0 }
  0x22   : > { %v641_v58 = vadd.f32 %v640_v52, %v316_v51  ;;  %v686_v60 = vadd.f32 %v685_v53, %v317_v54  ;;  %v339_v36 = vld [vmem:[%s2460_s11 + $0x178] sm:$0xff]  ;;  %v409_v37 = vld [vmem:[%s2460_s11 + $0x3a8] sm:$0xff]  ;;  %v410_v38 = vld [vmem:[%s2460_s11 + $0x3b0] sm:$0xff]  ;;  %v894_v47 = vsel %vm723_vm0, %v408_v34, 0.0 }
  0x23   : > { %v740_v62 = vadd.f32 %v739_v56, %v738_v55  ;;  %v411_v39 = vld [vmem:[%s2460_s11 + $0x3b8] sm:$0xff]  ;;  %v412_v41 = vld [vmem:[%s2460_s11 + $0x3c0] sm:$0xff]  ;;  %v413_v42 = vld [vmem:[%s2460_s11 + $0x3c8] sm:$0xff]  ;;  %v806_v45 = vadd.f32 %v409_v37, %v406_v32  ;;  %v850_v46 = vadd.f32 %v410_v38, %v407_v33 }
  0x24   : > { %v642_v1 = vadd.f32 %v641_v58, %v319_v59  ;;  %v687_v3 = vadd.f32 %v686_v60, %v320_v61  ;;  %v414_v43 = vld [vmem:[%s2460_s11 + $0x3d0] sm:$0xff]  ;;  %v415_v48 = vld [vmem:[%s2460_s11 + $0x3d8] sm:$0xff]  ;;  %v416_v49 = vld [vmem:[%s2460_s11 + $0x3e0] sm:$0xff]  ;;  %v895_v52 = vsel %vm723_vm0, %v411_v39, 0.0 }
  0x25   : > { %v742_v5 = vadd.f32 %v741_v63, %v740_v62  ;;  %v417_v50 = vld [vmem:[%s2460_s11 + $0x3e8] sm:$0xff]  ;;  %v338_v54 = vld [vmem:[%s2460_s11 + $0x170] sm:$0xff]  ;;  %v807_v56 = vadd.f32 %v806_v45, %v412_v41  ;;  %v851_v57 = vadd.f32 %v850_v46, %v413_v42  ;;  %v897_v58 = vsel %vm723_vm0, %v414_v43, 0.0  ;;  %v419_v60 = vld [vmem:[%s2460_s11 + $0x3f8] sm:$0xff] }
  0x26   : > { %v643_v8 = vadd.f32 %v642_v1, %v322_v2  ;;  %v688_v10 = vadd.f32 %v687_v3, %v323_v4  ;;  %v337_v53 = vld [vmem:[%s2460_s11 + $0x168] sm:$0xff]  ;;  %v418_v59 = vld [vmem:[%s2460_s11 + $0x3f0] sm:$0xff]  ;;  %v420_v61 = vld [vmem:[%s2460_s11 + $0x400] sm:$0xff]  ;;  %v896_v63 = vadd.f32 %v895_v52, %v894_v47  ;;  %v753_v1 = vsel %vm723_vm0, %v339_v36, 0.0 }
  0x27   : > { %v744_v12 = vadd.f32 %v743_v6, %v742_v5  ;;  %v342_v0 = vld [vmem:[%s2460_s11 + $0x190] sm:$0xff]  ;;  %v808_v2 = vadd.f32 %v807_v56, %v415_v48  ;;  %v852_v3 = vadd.f32 %v851_v57, %v416_v49  ;;  %v899_v4 = vsel %vm723_vm0, %v417_v50, 0.0  ;;  %v421_v5 = vld [vmem:[%s2460_s11 + $0x408] sm:$0xff]  ;;  %v423_v7 = vld [vmem:[%s2460_s11 + $0x418] sm:$0xff] }
  0x28   : > { %v644_v15 = vadd.f32 %v643_v8, %v325_v9  ;;  %v689_v17 = vadd.f32 %v688_v10, %v326_v11  ;;  %v422_v6 = vld [vmem:[%s2460_s11 + $0x410] sm:$0xff]  ;;  %v898_v9 = vadd.f32 %v897_v58, %v896_v63  ;;  %v340_v10 = vld [vmem:[%s2460_s11 + $0x180] sm:$0xff]  ;;  %v341_v11 = vld [vmem:[%s2460_s11 + $0x188] sm:$0xff] }
  0x29   : > { %v746_v19 = vadd.f32 %v745_v13, %v744_v12  ;;  %v809_v13 = vadd.f32 %v808_v2, %v418_v59  ;;  %v853_v14 = vadd.f32 %v852_v3, %v419_v60  ;;  %v345_v21 = vld [vmem:[%s2460_s11 + $0x1a8] sm:$0xff]  ;;  %v344_v32 = vld [vmem:[%s2460_s11 + $0x1a0] sm:$0xff]  ;;  %v430_v37 = vld [vmem:[%s2460_s11 + $0x450] sm:$0xff] }
  0x2a   : > { %v645_v22 = vadd.f32 %v644_v15, %v328_v16  ;;  %v690_v24 = vadd.f32 %v689_v17, %v329_v18  ;;  %v901_v15 = vsel %vm723_vm0, %v420_v61, 0.0  ;;  %v424_v16 = vld [vmem:[%s2460_s11 + $0x420] sm:$0xff]  ;;  %v425_v17 = vld [vmem:[%s2460_s11 + $0x428] sm:$0xff]  ;;  %v426_v18 = vld [vmem:[%s2460_s11 + $0x430] sm:$0xff]  ;;  %v757_v43 = vsel %vm723_vm0, %v345_v21, 0.0 }
  0x2b   : > { %v748_v26 = vadd.f32 %v747_v20, %v746_v19  ;;  %v900_v20 = vadd.f32 %v899_v4, %v898_v9  ;;  %v905_v36 = vsel %vm723_vm0, %v426_v18, 0.0  ;;  %v431_v38 = vld [vmem:[%s2460_s11 + $0x458] sm:$0xff]  ;;  %v432_v39 = vld [vmem:[%s2460_s11 + $0x460] sm:$0xff]  ;;  %v433_v47 = vld [vmem:[%s2460_s11 + $0x468] sm:$0xff] }
  0x2c   : > { %v646_v31 = vadd.f32 %v645_v22, %v331_v23  ;;  %v691_v35 = vadd.f32 %v690_v24, %v332_v25  ;;  %v755_v22 = vsel %vm723_vm0, %v342_v0, 0.0  ;;  %v810_v23 = vadd.f32 %v809_v13, %v421_v5  ;;  %v348_v42 = vld [vmem:[%s2460_s11 + $0x1c0] sm:$0xff]  ;;  %v434_v48 = vld [vmem:[%s2460_s11 + $0x470] sm:$0xff]  ;;  %v435_v49 = vld [vmem:[%s2460_s11 + $0x478] sm:$0xff] }
  0x2d   : > { %v750_v40 = vadd.f32 %v749_v27, %v748_v26  ;;  %v854_v24 = vadd.f32 %v853_v14, %v422_v6  ;;  %v903_v25 = vsel %vm723_vm0, %v423_v7, 0.0  ;;  %v427_v26 = vld [vmem:[%s2460_s11 + $0x438] sm:$0xff]  ;;  %v428_v27 = vld [vmem:[%s2460_s11 + $0x440] sm:$0xff]  ;;  %v902_v30 = vadd.f32 %v901_v15, %v900_v20  ;;  %v346_v52 = vld [vmem:[%s2460_s11 + $0x1b0] sm:$0xff] }
  0x2e   : > { %v647_v51 = vadd.f32 %v646_v31, %v334_v28  ;;  %v692_v55 = vadd.f32 %v691_v35, %v335_v29  ;;  %v429_v28 = vld [vmem:[%s2460_s11 + $0x448] sm:$0xff]  ;;  %v343_v31 = vld [vmem:[%s2460_s11 + $0x198] sm:$0xff]  ;;  %v811_v34 = vadd.f32 %v810_v23, %v424_v16  ;;  %v909_v57 = vsel %vm723_vm0, %v432_v39, 0.0  ;;  %v436_v58 = vld [vmem:[%s2460_s11 + $0x480] sm:$0xff] }
  0x2f   : > { %v752_v62 = vadd.f32 %v751_v44, %v750_v40  ;;  %v855_v35 = vadd.f32 %v854_v24, %v425_v17  ;;  %v904_v41 = vadd.f32 %v903_v25, %v902_v30  ;;  %v907_v46 = vsel %vm723_vm0, %v429_v28, 0.0  ;;  %v437_v59 = vld [vmem:[%s2460_s11 + $0x488] sm:$0xff]  ;;  %v438_v60 = vld [vmem:[%s2460_s11 + $0x490] sm:$0xff]  ;;  %v351_v63 = vld [vmem:[%s2460_s11 + $0x1d8] sm:$0xff] }
  0x30   : > { %v648_v8 = vadd.f32 %v647_v51, %v337_v53  ;;  %v693_v12 = vadd.f32 %v692_v55, %v338_v54  ;;  %v812_v44 = vadd.f32 %v811_v34, %v427_v26  ;;  %v347_v53 = vld [vmem:[%s2460_s11 + $0x1b8] sm:$0xff]  ;;  %v759_v0 = vsel %vm723_vm0, %v348_v42, 0.0  ;;  %v440_v5 = vld [vmem:[%s2460_s11 + $0x4a0] sm:$0xff]  ;;  %v441_v6 = vld [vmem:[%s2460_s11 + $0x4a8] sm:$0xff] }
  0x31   : > { %v754_v19 = vadd.f32 %v753_v1, %v752_v62  ;;  %v856_v45 = vadd.f32 %v855_v35, %v428_v27  ;;  %v906_v51 = vadd.f32 %v905_v36, %v904_v41  ;;  %v911_v3 = vsel %vm723_vm0, %v435_v49, 0.0  ;;  %v439_v4 = vld [vmem:[%s2460_s11 + $0x498] sm:$0xff]  ;;  %v349_v9 = vld [vmem:[%s2460_s11 + $0x1c8] sm:$0xff]  ;;  %v442_v15 = vld [vmem:[%s2460_s11 + $0x4b0] sm:$0xff] }
  0x32   : > { %v649_v29 = vadd.f32 %v648_v8, %v340_v10  ;;  %v694_v33 = vadd.f32 %v693_v12, %v341_v11  ;;  %v813_v55 = vadd.f32 %v812_v44, %v430_v37  ;;  %v350_v10 = vld [vmem:[%s2460_s11 + $0x1d0] sm:$0xff]  ;;  %v913_v14 = vsel %vm723_vm0, %v438_v60, 0.0  ;;  %v443_v16 = vld [vmem:[%s2460_s11 + $0x4b8] sm:$0xff]  ;;  %v444_v17 = vld [vmem:[%s2460_s11 + $0x4c0] sm:$0xff] }
  0x33   : > { %v756_v40 = vadd.f32 %v755_v22, %v754_v19  ;;  %v857_v56 = vadd.f32 %v856_v45, %v431_v38  ;;  %v908_v62 = vadd.f32 %v907_v46, %v906_v51  ;;  %v354_v20 = vld [vmem:[%s2460_s11 + $0x1f0] sm:$0xff]  ;;  %v761_v21 = vsel %vm723_vm0, %v351_v63, 0.0  ;;  %v445_v25 = vld [vmem:[%s2460_s11 + $0x4c8] sm:$0xff]  ;;  %v447_v27 = vld [vmem:[%s2460_s11 + $0x4d8] sm:$0xff] }
  0x34   : > { %v650_v50 = vadd.f32 %v649_v29, %v343_v31  ;;  %v695_v54 = vadd.f32 %v694_v33, %v344_v32  ;;  %v814_v1 = vadd.f32 %v813_v55, %v433_v47  ;;  %v915_v24 = vsel %vm723_vm0, %v441_v6, 0.0  ;;  %v446_v26 = vld [vmem:[%s2460_s11 + $0x4d0] sm:$0xff]  ;;  %v352_v30 = vld [vmem:[%s2460_s11 + $0x1e0] sm:$0xff]  ;;  %v353_v31 = vld [vmem:[%s2460_s11 + $0x1e8] sm:$0xff] }
  0x35   : > { %v758_v61 = vadd.f32 %v757_v43, %v756_v40  ;;  %v858_v2 = vadd.f32 %v857_v56, %v434_v48  ;;  %v910_v8 = vadd.f32 %v909_v57, %v908_v62  ;;  %v917_v35 = vsel %vm723_vm0, %v444_v17, 0.0  ;;  %v448_v36 = vld [vmem:[%s2460_s11 + $0x4e0] sm:$0xff]  ;;  %v449_v37 = vld [vmem:[%s2460_s11 + $0x4e8] sm:$0xff]  ;;  %v450_v38 = vld [vmem:[%s2460_s11 + $0x4f0] sm:$0xff] }
  0x36   : > { %v651_v7 = vadd.f32 %v650_v50, %v346_v52  ;;  %v696_v11 = vadd.f32 %v695_v54, %v347_v53  ;;  %v815_v12 = vadd.f32 %v814_v1, %v436_v58  ;;  %v357_v41 = vld [vmem:[%s2460_s11 + $0x208] sm:$0xff]  ;;  %v763_v42 = vsel %vm723_vm0, %v354_v20, 0.0  ;;  %v451_v46 = vld [vmem:[%s2460_s11 + $0x4f8] sm:$0xff]  ;;  %v452_v47 = vld [vmem:[%s2460_s11 + $0x500] sm:$0xff] }
  0x37   : > { %v859_v13 = vadd.f32 %v858_v2, %v437_v59  ;;  %v760_v18 = vadd.f32 %v759_v0, %v758_v61  ;;  %v912_v19 = vadd.f32 %v911_v3, %v910_v8  ;;  %v919_v45 = vsel %vm723_vm0, %v447_v27, 0.0  ;;  %v453_v48 = vld [vmem:[%s2460_s11 + $0x508] sm:$0xff]  ;;  %v355_v51 = vld [vmem:[%s2460_s11 + $0x1f8] sm:$0xff]  ;;  %v356_v52 = vld [vmem:[%s2460_s11 + $0x200] sm:$0xff] }
  0x38   : > { %v816_v22 = vadd.f32 %v815_v12, %v439_v4  ;;  %v652_v28 = vadd.f32 %v651_v7, %v349_v9  ;;  %v697_v32 = vadd.f32 %v696_v11, %v350_v10  ;;  %v921_v56 = vsel %vm723_vm0, %v450_v38, 0.0  ;;  %v454_v57 = vld [vmem:[%s2460_s11 + $0x510] sm:$0xff]  ;;  %v455_v58 = vld [vmem:[%s2460_s11 + $0x518] sm:$0xff]  ;;  %v456_v59 = vld [vmem:[%s2460_s11 + $0x520] sm:$0xff] }
  0x39   : > { %v860_v23 = vadd.f32 %v859_v13, %v440_v5  ;;  %v914_v29 = vadd.f32 %v913_v14, %v912_v19  ;;  %v762_v39 = vadd.f32 %v761_v21, %v760_v18  ;;  %v360_v62 = vld [vmem:[%s2460_s11 + $0x220] sm:$0xff]  ;;  %v765_v63 = vsel %vm723_vm0, %v357_v41, 0.0  ;;  %v457_v3 = vld [vmem:[%s2460_s11 + $0x528] sm:$0xff]  ;;  %v458_v4 = vld [vmem:[%s2460_s11 + $0x530] sm:$0xff] }
  0x3a   : > { %v817_v33 = vadd.f32 %v816_v22, %v442_v15  ;;  %v653_v49 = vadd.f32 %v652_v28, %v352_v30  ;;  %v698_v53 = vadd.f32 %v697_v32, %v353_v31  ;;  %v923_v2 = vsel %vm723_vm0, %v453_v48, 0.0  ;;  %v459_v5 = vld [vmem:[%s2460_s11 + $0x538] sm:$0xff]  ;;  %v358_v8 = vld [vmem:[%s2460_s11 + $0x210] sm:$0xff]  ;;  %v460_v14 = vld [vmem:[%s2460_s11 + $0x540] sm:$0xff] }
  0x3b   : > { %v861_v34 = vadd.f32 %v860_v23, %v443_v16  ;;  %v916_v40 = vadd.f32 %v915_v24, %v914_v29  ;;  %v764_v60 = vadd.f32 %v763_v42, %v762_v39  ;;  %v359_v9 = vld [vmem:[%s2460_s11 + $0x218] sm:$0xff]  ;;  %v925_v13 = vsel %vm723_vm0, %v456_v59, 0.0  ;;  %v461_v15 = vld [vmem:[%s2460_s11 + $0x548] sm:$0xff]  ;;  %v462_v16 = vld [vmem:[%s2460_s11 + $0x550] sm:$0xff] }
  0x3c   : > { %v818_v43 = vadd.f32 %v817_v33, %v445_v25  ;;  %v654_v6 = vadd.f32 %v653_v49, %v355_v51  ;;  %v699_v10 = vadd.f32 %v698_v53, %v356_v52  ;;  %v361_v19 = vld [vmem:[%s2460_s11 + $0x228] sm:$0xff]  ;;  %v767_v20 = vsel %vm723_vm0, %v360_v62, 0.0  ;;  %v363_v24 = vld [vmem:[%s2460_s11 + $0x238] sm:$0xff]  ;;  %v362_v29 = vld [vmem:[%s2460_s11 + $0x230] sm:$0xff] }
  0x3d   : > { %v862_v44 = vadd.f32 %v861_v34, %v446_v26  ;;  %v918_v50 = vadd.f32 %v917_v35, %v916_v40  ;;  %v766_v17 = vadd.f32 %v765_v63, %v764_v60  ;;  %v927_v23 = vsel %vm723_vm0, %v459_v5, 0.0  ;;  %v463_v25 = vld [vmem:[%s2460_s11 + $0x558] sm:$0xff]  ;;  %v465_v26 = vld [vmem:[%s2460_s11 + $0x568] sm:$0xff]  ;;  %v366_v30 = vld [vmem:[%s2460_s11 + $0x250] sm:$0xff] }
  0x3e   : > { %v819_v54 = vadd.f32 %v818_v43, %v448_v36  ;;  %v655_v27 = vadd.f32 %v654_v6, %v358_v8  ;;  %v464_v31 = vld [vmem:[%s2460_s11 + $0x560] sm:$0xff]  ;;  %v700_v32 = vadd.f32 %v699_v10, %v359_v9  ;;  %v929_v35 = vsel %vm723_vm0, %v462_v16, 0.0  ;;  %v369_v36 = vld [vmem:[%s2460_s11 + $0x268] sm:$0xff]  ;;  %v375_v43 = vld [vmem:[%s2460_s11 + $0x298] sm:$0xff] }
  0x3f   : > { %v863_v55 = vadd.f32 %v862_v44, %v449_v37  ;;  %v920_v61 = vadd.f32 %v919_v45, %v918_v50  ;;  %v466_v37 = vld [vmem:[%s2460_s11 + $0x570] sm:$0xff]  ;;  %v468_v38 = vld [vmem:[%s2460_s11 + $0x580] sm:$0xff]  ;;  %v768_v39 = vadd.f32 %v767_v20, %v766_v17  ;;  %v467_v44 = vld [vmem:[%s2460_s11 + $0x578] sm:$0xff]  ;;  %v769_v45 = vsel %vm723_vm0, %v363_v24, 0.0 }
  0x40   : > { %v820_v0 = vadd.f32 %v819_v54, %v451_v46  ;;  %v364_v41 = vld [vmem:[%s2460_s11 + $0x240] sm:$0xff]  ;;  %v365_v48 = vld [vmem:[%s2460_s11 + $0x248] sm:$0xff]  ;;  %v470_v50 = vld [vmem:[%s2460_s11 + $0x590] sm:$0xff]  ;;  %v656_v52 = vadd.f32 %v655_v27, %v361_v19  ;;  %v771_v59 = vsel %vm723_vm0, %v366_v30, 0.0  ;;  %v2666_v9 = vsel %vm723_vm0, %v375_v43, 0.0 }
  0x41   : > { %v864_v1 = vadd.f32 %v863_v55, %v452_v47  ;;  %v922_v7 = vadd.f32 %v921_v56, %v920_v61  ;;  %v372_v42 = vld [vmem:[%s2460_s11 + $0x280] sm:$0xff]  ;;  %v931_v47 = vsel %vm723_vm0, %v465_v26, 0.0  ;;  %v469_v49 = vld [vmem:[%s2460_s11 + $0x588] sm:$0xff]  ;;  %v471_v51 = vld [vmem:[%s2460_s11 + $0x598] sm:$0xff]  ;;  %v933_v61 = vsel %vm723_vm0, %v468_v38, 0.0 }
  0x42   : > { %v821_v11 = vadd.f32 %v820_v0, %v454_v57  ;;  %v472_v55 = vld [vmem:[%s2460_s11 + $0x5a0] sm:$0xff]  ;;  %v523_v57 = vld [vmem:[%s2460_s11 + $0x738] sm:$0xff]  ;;  %v474_v62 = vld [vmem:[%s2460_s11 + $0x5b0] sm:$0xff]  ;;  %v2663_v8 = vsel %vm723_vm0, %v372_v42, 0.0  ;;  %v657_v16 = vadd.f32 %v656_v52, %v364_v41 }
  0x43   : > { %v865_v12 = vadd.f32 %v864_v1, %v455_v58  ;;  %v924_v18 = vadd.f32 %v923_v2, %v922_v7  ;;  %v520_v56 = vld [vmem:[%s2460_s11 + $0x720] sm:$0xff]  ;;  %v701_v58 = vadd.f32 %v700_v32, %v362_v29  ;;  %v521_v63 = vld [vmem:[%s2460_s11 + $0x728] sm:$0xff]  ;;  %v770_v1 = vadd.f32 %v769_v45, %v768_v39  ;;  %v378_v5 = vld [vmem:[%s2460_s11 + $0x2b0] sm:$0xff] }
  0x44   : > { %v822_v21 = vadd.f32 %v821_v11, %v457_v3  ;;  %v524_v0 = vld [vmem:[%s2460_s11 + $0x740] sm:$0xff]  ;;  %v773_v2 = vsel %vm723_vm0, %v369_v36, 0.0  ;;  %v473_v6 = vld [vmem:[%s2460_s11 + $0x5a8] sm:$0xff]  ;;  %v526_v7 = vld [vmem:[%s2460_s11 + $0x750] sm:$0xff]  ;;  %v935_v11 = vsel %vm723_vm0, %v471_v51, 0.0  ;;  %v975_v19 = vadd.f32 %v523_v57, %v520_v56 }
  0x45   : > { %v866_v22 = vadd.f32 %v865_v12, %v458_v4  ;;  %v926_v28 = vadd.f32 %v925_v13, %v924_v18  ;;  %v367_v12 = vld [vmem:[%s2460_s11 + $0x258] sm:$0xff]  ;;  %v381_v20 = vld [vmem:[%s2460_s11 + $0x2c8] sm:$0xff]  ;;  %v1019_v26 = vadd.f32 %v524_v0, %v521_v63  ;;  %v368_v27 = vld [vmem:[%s2460_s11 + $0x260] sm:$0xff]  ;;  %v772_v30 = vadd.f32 %v771_v59, %v770_v1 }
  0x46   : > { %v823_v33 = vadd.f32 %v822_v21, %v460_v14  ;;  %v475_v13 = vld [vmem:[%s2460_s11 + $0x5b8] sm:$0xff]  ;;  %v477_v14 = vld [vmem:[%s2460_s11 + $0x5c8] sm:$0xff]  ;;  %v476_v21 = vld [vmem:[%s2460_s11 + $0x5c0] sm:$0xff]  ;;  %v2692_v45 = vsel %vm723_vm0, %v381_v20, 0.0  ;;  %v658_v52 = vadd.f32 %v657_v16, %v367_v12 }
  0x47   : > { %v867_v34 = vadd.f32 %v866_v22, %v461_v15  ;;  %v928_v40 = vadd.f32 %v927_v23, %v926_v28  ;;  %v527_v15 = vld [vmem:[%s2460_s11 + $0x758] sm:$0xff]  ;;  %v529_v22 = vld [vmem:[%s2460_s11 + $0x768] sm:$0xff]  ;;  %v702_v23 = vadd.f32 %v701_v58, %v365_v48  ;;  %v478_v28 = vld [vmem:[%s2460_s11 + $0x5d0] sm:$0xff]  ;;  %v939_v39 = vsel %vm723_vm0, %v477_v14, 0.0 }
  0x48   : > { %v824_v46 = vadd.f32 %v823_v33, %v463_v25  ;;  %v937_v25 = vsel %vm723_vm0, %v474_v62, 0.0  ;;  %v530_v29 = vld [vmem:[%s2460_s11 + $0x770] sm:$0xff]  ;;  %v976_v33 = vadd.f32 %v975_v19, %v526_v7  ;;  %v532_v36 = vld [vmem:[%s2460_s11 + $0x780] sm:$0xff]  ;;  %v525_v43 = vld [vmem:[%s2460_s11 + $0x748] sm:$0xff]  ;;  %v774_v59 = vadd.f32 %v773_v2, %v772_v30 }
  0x49   : > { %v868_v53 = vadd.f32 %v867_v34, %v464_v31  ;;  %v930_v54 = vadd.f32 %v929_v35, %v928_v40  ;;  %v479_v34 = vld [vmem:[%s2460_s11 + $0x5d8] sm:$0xff]  ;;  %v481_v35 = vld [vmem:[%s2460_s11 + $0x5e8] sm:$0xff]  ;;  %v1020_v40 = vadd.f32 %v1019_v26, %v527_v15  ;;  %v370_v41 = vld [vmem:[%s2460_s11 + $0x270] sm:$0xff] }
  0x4a   : > { %v825_v60 = vadd.f32 %v824_v46, %v466_v37  ;;  %v2684_v37 = vsel %vm723_vm0, %v378_v5, 0.0  ;;  %v522_v42 = vld [vmem:[%s2460_s11 + $0x730] sm:$0xff]  ;;  %v977_v48 = vadd.f32 %v976_v33, %v529_v22  ;;  %v535_v51 = vld [vmem:[%s2460_s11 + $0x798] sm:$0xff]  ;;  %v528_v56 = vld [vmem:[%s2460_s11 + $0x760] sm:$0xff] }
  0x4b   : > { %v869_v3 = vadd.f32 %v868_v53, %v467_v44  ;;  %v932_v4 = vadd.f32 %v931_v47, %v930_v54  ;;  %v533_v44 = vld [vmem:[%s2460_s11 + $0x788] sm:$0xff]  ;;  %v703_v53 = vadd.f32 %v702_v23, %v368_v27  ;;  %v531_v57 = vld [vmem:[%s2460_s11 + $0x778] sm:$0xff]  ;;  %v536_v58 = vld [vmem:[%s2460_s11 + $0x7a0] sm:$0xff]  ;;  %v1063_v5 = vsel %vm723_vm0, %v522_v42, 0.0 }
  0x4c   : > { %v826_v10 = vadd.f32 %v825_v60, %v469_v49  ;;  %v480_v49 = vld [vmem:[%s2460_s11 + $0x5e0] sm:$0xff]  ;;  %v978_v62 = vadd.f32 %v977_v48, %v532_v36  ;;  %v371_v63 = vld [vmem:[%s2460_s11 + $0x278] sm:$0xff]  ;;  %v538_v1 = vld [vmem:[%s2460_s11 + $0x7b0] sm:$0xff]  ;;  %v1066_v20 = vsel %vm723_vm0, %v528_v56, 0.0 }
  0x4d   : > { %v870_v17 = vadd.f32 %v869_v3, %v470_v50  ;;  %v934_v18 = vadd.f32 %v933_v61, %v932_v4  ;;  %v482_v50 = vld [vmem:[%s2460_s11 + $0x5f0] sm:$0xff]  ;;  %v384_v0 = vld [vmem:[%s2460_s11 + $0x2e0] sm:$0xff]  ;;  %v941_v12 = vsel %vm723_vm0, %v480_v49, 0.0  ;;  %v483_v15 = vld [vmem:[%s2460_s11 + $0x5f8] sm:$0xff]  ;;  %v776_v49 = vadd.f32 %v2663_v8, %v774_v59 }
  0x4e   : > { %v827_v24 = vadd.f32 %v826_v10, %v472_v55  ;;  %v1021_v55 = vadd.f32 %v1020_v40, %v530_v29  ;;  %v484_v7 = vld [vmem:[%s2460_s11 + $0x600] sm:$0xff]  ;;  %v534_v2 = vld [vmem:[%s2460_s11 + $0x790] sm:$0xff]  ;;  %v539_v10 = vld [vmem:[%s2460_s11 + $0x7b8] sm:$0xff]  ;;  %v2718_v26 = vsel %vm723_vm0, %v384_v0, 0.0 }
  0x4f   : > { %v871_v31 = vadd.f32 %v870_v17, %v473_v6  ;;  %v936_v32 = vadd.f32 %v935_v11, %v934_v18  ;;  %v1064_v6 = vsel %vm723_vm0, %v525_v43, 0.0  ;;  %v485_v16 = vld [vmem:[%s2460_s11 + $0x608] sm:$0xff]  ;;  %v659_v18 = vadd.f32 %v658_v52, %v370_v41  ;;  %v374_v29 = vld [vmem:[%s2460_s11 + $0x290] sm:$0xff]  ;;  %v387_v30 = vld [vmem:[%s2460_s11 + $0x2f8] sm:$0xff] }
  0x50   : > { %v828_v38 = vadd.f32 %v827_v24, %v475_v13  ;;  %v1022_v4 = vadd.f32 %v1021_v55, %v533_v44  ;;  %v979_v13 = vadd.f32 %v978_v62, %v535_v51  ;;  %v1065_v14 = vadd.f32 %v1064_v6, %v1063_v5  ;;  %v541_v17 = vld [vmem:[%s2460_s11 + $0x7c8] sm:$0xff]  ;;  %v542_v24 = vld [vmem:[%s2460_s11 + $0x7d0] sm:$0xff]  ;;  %v487_v36 = vld [vmem:[%s2460_s11 + $0x618] sm:$0xff] }
  0x51   : > { %v872_v46 = vadd.f32 %v871_v31, %v476_v21  ;;  %v938_v47 = vadd.f32 %v937_v25, %v936_v32  ;;  %v1068_v21 = vsel %vm723_vm0, %v531_v57, 0.0  ;;  %v373_v22 = vld [vmem:[%s2460_s11 + $0x288] sm:$0xff]  ;;  %v704_v25 = vadd.f32 %v703_v53, %v371_v63  ;;  %v544_v31 = vld [vmem:[%s2460_s11 + $0x7e0] sm:$0xff]  ;;  %v486_v44 = vld [vmem:[%s2460_s11 + $0x610] sm:$0xff] }
  0x52   : > { %v829_v54 = vadd.f32 %v828_v38, %v478_v28  ;;  %v1023_v19 = vadd.f32 %v1022_v4, %v536_v58  ;;  %v537_v23 = vld [vmem:[%s2460_s11 + $0x7a8] sm:$0xff]  ;;  %v980_v27 = vadd.f32 %v979_v13, %v538_v1  ;;  %v1067_v28 = vadd.f32 %v1066_v20, %v1065_v14  ;;  %v540_v38 = vld [vmem:[%s2460_s11 + $0x7c0] sm:$0xff]  ;;  %v543_v53 = vld [vmem:[%s2460_s11 + $0x7d8] sm:$0xff] }
  0x53   : > { %v873_v60 = vadd.f32 %v872_v46, %v479_v34  ;;  %v940_v61 = vadd.f32 %v939_v39, %v938_v47  ;;  %v545_v39 = vld [vmem:[%s2460_s11 + $0x7e8] sm:$0xff]  ;;  %v943_v41 = vsel %vm723_vm0, %v483_v15, 0.0  ;;  %v488_v46 = vld [vmem:[%s2460_s11 + $0x620] sm:$0xff]  ;;  %v547_v47 = vld [vmem:[%s2460_s11 + $0x7f8] sm:$0xff]  ;;  %v660_v48 = vadd.f32 %v659_v18, %v373_v22 }
  0x54   : > { %v830_v3 = vadd.f32 %v829_v54, %v481_v35  ;;  %v1024_v34 = vadd.f32 %v1023_v19, %v539_v10  ;;  %v1070_v35 = vsel %vm723_vm0, %v534_v2, 0.0  ;;  %v981_v42 = vadd.f32 %v980_v27, %v541_v17  ;;  %v376_v52 = vld [vmem:[%s2460_s11 + $0x2a0] sm:$0xff]  ;;  %v390_v8 = vld [vmem:[%s2460_s11 + $0x310] sm:$0xff]  ;;  %v551_v4 = vld [vmem:[%s2460_s11 + $0x818] sm:$0xff] }
  0x55   : > { %v874_v11 = vadd.f32 %v873_v60, %v482_v50  ;;  %v942_v33 = vadd.f32 %v941_v12, %v940_v61  ;;  %v1069_v43 = vadd.f32 %v1068_v21, %v1067_v28  ;;  %v1072_v51 = vsel %vm723_vm0, %v537_v23, 0.0  ;;  %v548_v54 = vld [vmem:[%s2460_s11 + $0x800] sm:$0xff]  ;;  %v377_v60 = vld [vmem:[%s2460_s11 + $0x2a8] sm:$0xff]  ;;  %v550_v59 = vld [vmem:[%s2460_s11 + $0x810] sm:$0xff] }
  0x56   : > { %v831_v32 = vadd.f32 %v830_v3, %v484_v7  ;;  %v1025_v50 = vadd.f32 %v1024_v34, %v542_v24  ;;  %v705_v55 = vadd.f32 %v704_v25, %v374_v29  ;;  %v2737_v56 = vsel %vm723_vm0, %v387_v30, 0.0  ;;  %v490_v1 = vld [vmem:[%s2460_s11 + $0x630] sm:$0xff]  ;;  %v489_v10 = vld [vmem:[%s2460_s11 + $0x628] sm:$0xff]  ;;  %v379_v17 = vld [vmem:[%s2460_s11 + $0x2b8] sm:$0xff] }
  0x57   : > { %v875_v40 = vadd.f32 %v874_v11, %v485_v16  ;;  %v982_v57 = vadd.f32 %v981_v42, %v544_v31  ;;  %v1071_v58 = vadd.f32 %v1070_v35, %v1069_v43  ;;  %v944_v62 = vadd.f32 %v943_v41, %v942_v33  ;;  %v546_v3 = vld [vmem:[%s2460_s11 + $0x7f0] sm:$0xff]  ;;  %v491_v11 = vld [vmem:[%s2460_s11 + $0x638] sm:$0xff]  ;;  %v553_v12 = vld [vmem:[%s2460_s11 + $0x828] sm:$0xff] }
  0x58   : > { %v832_v61 = vadd.f32 %v831_v32, %v487_v36  ;;  %v1026_v63 = vadd.f32 %v1025_v50, %v545_v39  ;;  %v1074_v0 = vsel %vm723_vm0, %v540_v38, 0.0  ;;  %v945_v6 = vsel %vm723_vm0, %v486_v44, 0.0  ;;  %v549_v18 = vld [vmem:[%s2460_s11 + $0x808] sm:$0xff]  ;;  %v554_v19 = vld [vmem:[%s2460_s11 + $0x830] sm:$0xff]  ;;  %v380_v24 = vld [vmem:[%s2460_s11 + $0x2c0] sm:$0xff] }
  0x59   : > { %v876_v5 = vadd.f32 %v875_v40, %v488_v46  ;;  %v983_v7 = vadd.f32 %v982_v57, %v547_v47  ;;  %v1073_v2 = vadd.f32 %v1072_v51, %v1071_v58  ;;  %v661_v13 = vadd.f32 %v660_v48, %v376_v52  ;;  %v556_v25 = vld [vmem:[%s2460_s11 + $0x840] sm:$0xff]  ;;  %v493_v31 = vld [vmem:[%s2460_s11 + $0x648] sm:$0xff]  ;;  %v494_v40 = vld [vmem:[%s2460_s11 + $0x650] sm:$0xff] }
  0x5a   : > { %v778_v14 = vadd.f32 %v2666_v9, %v776_v49  ;;  %v1027_v15 = vadd.f32 %v1026_v63, %v548_v54  ;;  %v1076_v16 = vsel %vm723_vm0, %v543_v53, 0.0  ;;  %v706_v20 = vadd.f32 %v705_v55, %v377_v60  ;;  %v393_v9 = vld [vmem:[%s2460_s11 + $0x328] sm:$0xff]  ;;  %v552_v32 = vld [vmem:[%s2460_s11 + $0x820] sm:$0xff]  ;;  %v559_v41 = vld [vmem:[%s2460_s11 + $0x858] sm:$0xff] }
  0x5b   : > { %v2756_v21 = vsel %vm723_vm0, %v390_v8, 0.0  ;;  %v984_v22 = vadd.f32 %v983_v7, %v550_v59  ;;  %v1075_v23 = vadd.f32 %v1074_v0, %v1073_v2  ;;  %v833_v27 = vadd.f32 %v832_v61, %v490_v1  ;;  %v557_v33 = vld [vmem:[%s2460_s11 + $0x848] sm:$0xff]  ;;  %v492_v39 = vld [vmem:[%s2460_s11 + $0x640] sm:$0xff]  ;;  %v382_v47 = vld [vmem:[%s2460_s11 + $0x2d0] sm:$0xff] }
  0x5c   : > { %v946_v28 = vadd.f32 %v945_v6, %v944_v62  ;;  %v1028_v29 = vadd.f32 %v1027_v15, %v551_v4  ;;  %v1078_v30 = vsel %vm723_vm0, %v546_v3, 0.0  ;;  %v877_v34 = vadd.f32 %v876_v5, %v491_v11  ;;  %v555_v48 = vld [vmem:[%s2460_s11 + $0x838] sm:$0xff]  ;;  %v560_v49 = vld [vmem:[%s2460_s11 + $0x860] sm:$0xff]  ;;  %v558_v61 = vld [vmem:[%s2460_s11 + $0x850] sm:$0xff] }
  0x5d   : > { %v947_v35 = vsel %vm723_vm0, %v489_v10, 0.0  ;;  %v985_v36 = vadd.f32 %v984_v22, %v553_v12  ;;  %v1077_v38 = vadd.f32 %v1076_v16, %v1075_v23  ;;  %v662_v42 = vadd.f32 %v661_v13, %v379_v17  ;;  %v383_v54 = vld [vmem:[%s2460_s11 + $0x2d8] sm:$0xff]  ;;  %v396_v55 = vld [vmem:[%s2460_s11 + $0x340] sm:$0xff]  ;;  %v497_v5 = vld [vmem:[%s2460_s11 + $0x668] sm:$0xff] }
  0x5e   : > { %v780_v43 = vadd.f32 %v2684_v37, %v778_v14  ;;  %v1029_v44 = vadd.f32 %v1028_v29, %v554_v19  ;;  %v1080_v46 = vsel %vm723_vm0, %v549_v18, 0.0  ;;  %v707_v50 = vadd.f32 %v706_v20, %v380_v24  ;;  %v562_v37 = vld [vmem:[%s2460_s11 + $0x870] sm:$0xff]  ;;  %v496_v59 = vld [vmem:[%s2460_s11 + $0x660] sm:$0xff]  ;;  %v563_v62 = vld [vmem:[%s2460_s11 + $0x878] sm:$0xff] }
  0x5f   : > { %v2775_v51 = vsel %vm723_vm0, %v393_v9, 0.0  ;;  %v986_v52 = vadd.f32 %v985_v36, %v556_v25  ;;  %v1079_v53 = vadd.f32 %v1078_v30, %v1077_v38  ;;  %v834_v57 = vadd.f32 %v833_v27, %v493_v31  ;;  %v495_v4 = vld [vmem:[%s2460_s11 + $0x658] sm:$0xff]  ;;  %v565_v6 = vld [vmem:[%s2460_s11 + $0x888] sm:$0xff]  ;;  %v566_v14 = vld [vmem:[%s2460_s11 + $0x890] sm:$0xff] }
  0x60   : > { %v948_v58 = vadd.f32 %v947_v35, %v946_v28  ;;  %v1030_v60 = vadd.f32 %v1029_v44, %v557_v33  ;;  %v1082_v8 = vsel %vm723_vm0, %v552_v32, 0.0  ;;  %v878_v63 = vadd.f32 %v877_v34, %v494_v40  ;;  %v385_v12 = vld [vmem:[%s2460_s11 + $0x2e8] sm:$0xff]  ;;  %v386_v19 = vld [vmem:[%s2460_s11 + $0x2f0] sm:$0xff]  ;;  %v568_v20 = vld [vmem:[%s2460_s11 + $0x8a0] sm:$0xff] }
  0x61   : > { %v949_v0 = vsel %vm723_vm0, %v492_v39, 0.0  ;;  %v987_v1 = vadd.f32 %v986_v52, %v559_v41  ;;  %v1081_v3 = vadd.f32 %v1080_v46, %v1079_v53  ;;  %v663_v7 = vadd.f32 %v662_v42, %v382_v47  ;;  %v561_v13 = vld [vmem:[%s2460_s11 + $0x868] sm:$0xff]  ;;  %v499_v25 = vld [vmem:[%s2460_s11 + $0x678] sm:$0xff]  ;;  %v564_v27 = vld [vmem:[%s2460_s11 + $0x880] sm:$0xff] }
  0x62   : > { %v782_v2 = vadd.f32 %v2692_v45, %v780_v43  ;;  %v1031_v10 = vadd.f32 %v1030_v60, %v560_v49  ;;  %v1084_v11 = vsel %vm723_vm0, %v555_v48, 0.0  ;;  %v708_v15 = vadd.f32 %v707_v50, %v383_v54  ;;  %v399_v45 = vld [vmem:[%s2460_s11 + $0x358] sm:$0xff]  ;;  %v569_v28 = vld [vmem:[%s2460_s11 + $0x8a8] sm:$0xff]  ;;  %v498_v33 = vld [vmem:[%s2460_s11 + $0x670] sm:$0xff] }
  0x63   : > { %v2794_v16 = vsel %vm723_vm0, %v396_v55, 0.0  ;;  %v988_v17 = vadd.f32 %v987_v1, %v562_v37  ;;  %v1083_v18 = vadd.f32 %v1082_v8, %v1081_v3  ;;  %v835_v22 = vadd.f32 %v834_v57, %v496_v59  ;;  %v500_v34 = vld [vmem:[%s2460_s11 + $0x680] sm:$0xff]  ;;  %v571_v35 = vld [vmem:[%s2460_s11 + $0x8b8] sm:$0xff]  ;;  %v389_v49 = vld [vmem:[%s2460_s11 + $0x308] sm:$0xff] }
  0x64   : > { %v950_v23 = vadd.f32 %v949_v0, %v948_v58  ;;  %v1032_v24 = vadd.f32 %v1031_v10, %v563_v62  ;;  %v1086_v9 = vsel %vm723_vm0, %v558_v61, 0.0  ;;  %v879_v29 = vadd.f32 %v878_v63, %v497_v5  ;;  %v388_v41 = vld [vmem:[%s2460_s11 + $0x300] sm:$0xff]  ;;  %v567_v42 = vld [vmem:[%s2460_s11 + $0x898] sm:$0xff]  ;;  %v574_v50 = vld [vmem:[%s2460_s11 + $0x8d0] sm:$0xff] }
  0x65   : > { %v951_v30 = vsel %vm723_vm0, %v495_v4, 0.0  ;;  %v989_v31 = vadd.f32 %v988_v17, %v565_v6  ;;  %v1085_v32 = vadd.f32 %v1084_v11, %v1083_v18  ;;  %v664_v36 = vadd.f32 %v663_v7, %v385_v12  ;;  %v572_v43 = vld [vmem:[%s2460_s11 + $0x8c0] sm:$0xff]  ;;  %v502_v37 = vld [vmem:[%s2460_s11 + $0x690] sm:$0xff]  ;;  %v575_v58 = vld [vmem:[%s2460_s11 + $0x8d8] sm:$0xff] }
  0x66   : > { %v784_v38 = vadd.f32 %v2718_v26, %v782_v2  ;;  %v1033_v39 = vadd.f32 %v1032_v24, %v566_v14  ;;  %v1088_v40 = vsel %vm723_vm0, %v561_v13, 0.0  ;;  %v709_v44 = vadd.f32 %v708_v15, %v386_v19  ;;  %v403_v26 = vld [vmem:[%s2460_s11 + $0x378] sm:$0x7]  ;;  %v570_v57 = vld [vmem:[%s2460_s11 + $0x8b0] sm:$0xff]  ;;  %v501_v62 = vld [vmem:[%s2460_s11 + $0x688] sm:$0xff] }
  0x67   : > { %v2813_v46 = vsel %vm723_vm0, %v399_v45, 0.0  ;;  %v990_v47 = vadd.f32 %v989_v31, %v568_v20  ;;  %v1087_v48 = vadd.f32 %v1086_v9, %v1085_v32  ;;  %v836_v52 = vadd.f32 %v835_v22, %v499_v25  ;;  %v503_v63 = vld [vmem:[%s2460_s11 + $0x698] sm:$0xff]  ;;  %v577_v0 = vld [vmem:[%s2460_s11 + $0x8e8] sm:$0xff]  ;;  %v578_v2 = vld [vmem:[%s2460_s11 + $0x8f0] sm:$0xff] }
  0x68   : > { %v952_v53 = vadd.f32 %v951_v30, %v950_v23  ;;  %v1034_v54 = vadd.f32 %v1033_v39, %v569_v28  ;;  %v1090_v55 = vsel %vm723_vm0, %v564_v27, 0.0  ;;  %v880_v60 = vadd.f32 %v879_v29, %v500_v34  ;;  %v391_v6 = vld [vmem:[%s2460_s11 + $0x318] sm:$0xff]  ;;  %v573_v7 = vld [vmem:[%s2460_s11 + $0x8c8] sm:$0xff]  ;;  %v392_v14 = vld [vmem:[%s2460_s11 + $0x320] sm:$0xff] }
  0x69   : > { %v953_v8 = vsel %vm723_vm0, %v498_v33, 0.0  ;;  %v991_v59 = vadd.f32 %v990_v47, %v571_v35  ;;  %v1089_v61 = vadd.f32 %v1088_v40, %v1087_v48  ;;  %v665_v1 = vadd.f32 %v664_v36, %v388_v41  ;;  %v404_v15 = vld [vmem:[%s2460_s11 + $0x380] sm:$0x7]  ;;  %v505_v20 = vld [vmem:[%s2460_s11 + $0x6a8] sm:$0xff]  ;;  %v506_v29 = vld [vmem:[%s2460_s11 + $0x6b0] sm:$0xff] }
  0x6a   : > { %v786_v3 = vadd.f32 %v2737_v56, %v784_v38  ;;  %v1035_v4 = vadd.f32 %v1034_v54, %v572_v43  ;;  %v1092_v5 = vsel %vm723_vm0, %v567_v42, 0.0  ;;  %v2832_v10 = vsel %vm670_vm1, %v403_v26, 0.0  ;;  %v580_v56 = vld [vmem:[%s2460_s11 + $0x900] sm:$0xff]  ;;  %v581_v23 = vld [vmem:[%s2460_s11 + $0x908] sm:$0xff]  ;;  %v583_v30 = vld [vmem:[%s2460_s11 + $0x918] sm:$0xff] }
  0x6b   : > { %v710_v11 = vadd.f32 %v709_v44, %v389_v49  ;;  %v992_v12 = vadd.f32 %v991_v59, %v574_v50  ;;  %v1091_v13 = vadd.f32 %v1090_v55, %v1089_v61  ;;  %v837_v17 = vadd.f32 %v836_v52, %v502_v37  ;;  %v576_v22 = vld [vmem:[%s2460_s11 + $0x8e0] sm:$0xff]  ;;  %v394_v35 = vld [vmem:[%s2460_s11 + $0x330] sm:$0xff]  ;;  %v579_v36 = vld [vmem:[%s2460_s11 + $0x8f8] sm:$0xff] }
  0x6c   : > { %v954_v18 = vadd.f32 %v953_v8, %v952_v53  ;;  %v1036_v19 = vadd.f32 %v1035_v4, %v575_v58  ;;  %v1094_v45 = vsel %vm723_vm0, %v570_v57, 0.0  ;;  %v881_v24 = vadd.f32 %v880_v60, %v503_v63  ;;  %v504_v28 = vld [vmem:[%s2460_s11 + $0x6a0] sm:$0xff]  ;;  %v395_v43 = vld [vmem:[%s2460_s11 + $0x338] sm:$0xff]  ;;  %v586_v44 = vld [vmem:[%s2460_s11 + $0x930] sm:$0xff] }
  0x6d   : > { %v955_v9 = vsel %vm723_vm0, %v501_v62, 0.0  ;;  %v993_v25 = vadd.f32 %v992_v12, %v577_v0  ;;  %v1093_v27 = vadd.f32 %v1092_v5, %v1091_v13  ;;  %v666_v31 = vadd.f32 %v665_v1, %v391_v6  ;;  %v584_v38 = vld [vmem:[%s2460_s11 + $0x920] sm:$0xff]  ;;  %v582_v52 = vld [vmem:[%s2460_s11 + $0x910] sm:$0xff]  ;;  %v587_v53 = vld [vmem:[%s2460_s11 + $0x938] sm:$0xff] }
  0x6e   : > { %v788_v32 = vadd.f32 %v2756_v21, %v786_v3  ;;  %v1037_v33 = vadd.f32 %v1036_v19, %v578_v2  ;;  %v1096_v34 = vsel %vm723_vm0, %v573_v7, 0.0  ;;  %v711_v39 = vadd.f32 %v710_v11, %v392_v14  ;;  %v402_v21 = vld [vmem:[%s2460_s11 + $0x370] sm:$0xff]  ;;  %v508_v50 = vld [vmem:[%s2460_s11 + $0x6c0] sm:$0xff]  ;;  %v507_v58 = vld [vmem:[%s2460_s11 + $0x6b8] sm:$0xff] }
  0x6f   : > { %v2851_v40 = vsel %vm670_vm1, %v404_v15, 0.0  ;;  %v994_v41 = vadd.f32 %v993_v25, %v580_v56  ;;  %v1095_v42 = vadd.f32 %v1094_v45, %v1093_v27  ;;  %v838_v47 = vadd.f32 %v837_v17, %v505_v20  ;;  %v509_v60 = vld [vmem:[%s2460_s11 + $0x6c8] sm:$0xff]  ;;  %v590_v3 = vld [vmem:[%s2460_s11 + $0x950] sm:$0xff]  ;;  %v592_v11 = vld [vmem:[%s2460_s11 + $0x960] sm:$0xff] }
  0x70   : > { %v956_v48 = vadd.f32 %v955_v9, %v954_v18  ;;  %v1038_v49 = vadd.f32 %v1037_v33, %v581_v23  ;;  %v1098_v26 = vsel %vm723_vm0, %v576_v22, 0.0  ;;  %v882_v54 = vadd.f32 %v881_v24, %v506_v29  ;;  %v589_v8 = vld [vmem:[%s2460_s11 + $0x948] sm:$0xff]  ;;  %v398_v2 = vld [vmem:[%s2460_s11 + $0x350] sm:$0xff]  ;;  %v511_v56 = vld [vmem:[%s2460_s11 + $0x6d8] sm:$0xff] }
  0x71   : > { %v957_v55 = vsel %vm723_vm0, %v504_v28, 0.0  ;;  %v995_v37 = vadd.f32 %v994_v41, %v583_v30  ;;  %v1097_v57 = vadd.f32 %v1096_v34, %v1095_v42  ;;  %v667_v59 = vadd.f32 %v666_v31, %v394_v35  ;;  %v397_v0 = vld [vmem:[%s2460_s11 + $0x348] sm:$0xff]  ;;  %v588_v17 = vld [vmem:[%s2460_s11 + $0x940] sm:$0xff]  ;;  %v510_v23 = vld [vmem:[%s2460_s11 + $0x6d0] sm:$0xff] }
  0x72   : > { %v790_v61 = vadd.f32 %v2775_v51, %v788_v32  ;;  %v1039_v62 = vadd.f32 %v1038_v49, %v584_v38  ;;  %v1100_v63 = vsel %vm723_vm0, %v579_v36, 0.0  ;;  %v585_v1 = vld [vmem:[%s2460_s11 + $0x928] sm:$0xff]  ;;  %v712_v4 = vadd.f32 %v711_v39, %v395_v43  ;;  %v512_v24 = vld [vmem:[%s2460_s11 + $0x6e0] sm:$0xff]  ;;  %v595_v9 = vld [vmem:[%s2460_s11 + $0x978] sm:$0xff] }
  0x73   : > { %v2870_v5 = vsel %vm723_vm0, %v402_v21, 0.0  ;;  %v996_v6 = vadd.f32 %v995_v37, %v586_v44  ;;  %v1099_v7 = vadd.f32 %v1098_v26, %v1097_v57  ;;  %v405_v51 = vld [vmem:[%s2460_s11 + $0x388] sm:$0x7]  ;;  %v839_v12 = vadd.f32 %v838_v47, %v508_v50  ;;  %v400_v30 = vld [vmem:[%s2460_s11 + $0x360] sm:$0xff]  ;;  %v591_v31 = vld [vmem:[%s2460_s11 + $0x958] sm:$0xff] }
  0x74   : > { %v958_v13 = vadd.f32 %v957_v55, %v956_v48  ;;  %v1040_v14 = vadd.f32 %v1039_v62, %v587_v53  ;;  %v1102_v15 = vsel %vm723_vm0, %v582_v52, 0.0  ;;  %v593_v18 = vld [vmem:[%s2460_s11 + $0x968] sm:$0xff]  ;;  %v883_v19 = vadd.f32 %v882_v54, %v509_v60  ;;  %v596_v32 = vld [vmem:[%s2460_s11 + $0x980] sm:$0xff]  ;;  %v598_v39 = vld [vmem:[%s2460_s11 + $0x990] sm:$0xff] }
  0x75   : > { %v959_v45 = vsel %vm723_vm0, %v507_v58, 0.0  ;;  %v997_v20 = vadd.f32 %v996_v6, %v589_v8  ;;  %v1101_v22 = vadd.f32 %v1100_v63, %v1099_v7  ;;  %v668_v25 = vadd.f32 %v667_v59, %v397_v0  ;;  %v401_v38 = vld [vmem:[%s2460_s11 + $0x368] sm:$0xff]  ;;  %v514_v44 = vld [vmem:[%s2460_s11 + $0x6f0] sm:$0xff]  ;;  %v599_v48 = vld [vmem:[%s2460_s11 + $0x998] sm:$0xff] }
  0x76   : > { %v792_v27 = vadd.f32 %v2794_v16, %v790_v61  ;;  %v1041_v28 = vadd.f32 %v1040_v14, %v590_v3  ;;  %v1104_v29 = vsel %vm723_vm0, %v585_v1, 0.0  ;;  %v713_v33 = vadd.f32 %v712_v4, %v398_v2  ;;  %v517_v16 = vld [vmem:[%s2460_s11 + $0x708] sm:$0x7]  ;;  %v594_v47 = vld [vmem:[%s2460_s11 + $0x970] sm:$0xff]  ;;  %v515_v54 = vld [vmem:[%s2460_s11 + $0x6f8] sm:$0xff] }
  0x77   : > { %v2889_v34 = vsel %vm797_vm2, %v405_v51, 0.0  ;;  %v998_v35 = vadd.f32 %v997_v20, %v592_v11  ;;  %v1103_v36 = vadd.f32 %v1102_v15, %v1101_v22  ;;  %v840_v41 = vadd.f32 %v839_v12, %v511_v56  ;;  %v513_v53 = vld [vmem:[%s2460_s11 + $0x6e8] sm:$0xff]  ;;  %v518_v8 = vld [vmem:[%s2460_s11 + $0x710] sm:$0x7]  ;;  %v604_v3 = vld [vmem:[%s2460_s11 + $0x9c0] sm:$0xff] }
  0x78   : > { %v960_v42 = vadd.f32 %v959_v45, %v958_v13  ;;  %v1042_v43 = vadd.f32 %v1041_v28, %v593_v18  ;;  %v1106_v21 = vsel %vm723_vm0, %v588_v17, 0.0  ;;  %v884_v49 = vadd.f32 %v883_v19, %v512_v24  ;;  %v601_v55 = vld [vmem:[%s2460_s11 + $0x9a8] sm:$0xff]  ;;  %v602_v61 = vld [vmem:[%s2460_s11 + $0x9b0] sm:$0xff]  ;;  %v600_v2 = vld [vmem:[%s2460_s11 + $0x9a0] sm:$0xff] }
  0x79   : > { %v961_v26 = vsel %vm723_vm0, %v510_v23, 0.0  ;;  %v999_v50 = vadd.f32 %v998_v35, %v595_v9  ;;  %v1105_v52 = vadd.f32 %v1104_v29, %v1103_v36  ;;  %v669_v37 = vadd.f32 %v668_v25, %v400_v30  ;;  %v597_v59 = vld [vmem:[%s2460_s11 + $0x988] sm:$0xff]  ;;  %v516_v15 = vld [vmem:[%s2460_s11 + $0x700] sm:$0xff]  ;;  %v607_v56 = vld [vmem:[%s2460_s11 + $0x9d8] sm:$0xff] }
  0x7a   : > { %v794_v57 = vadd.f32 %v2813_v46, %v792_v27  ;;  %v1043_v58 = vadd.f32 %v1042_v43, %v596_v32  ;;  %v1108_v60 = vsel %vm723_vm0, %v591_v31, 0.0  ;;  %v714_v62 = vadd.f32 %v713_v33, %v401_v38  ;;  %v605_v51 = vld [vmem:[%s2460_s11 + $0x9c8] sm:$0xff]  ;;  %v603_v20 = vld [vmem:[%s2460_s11 + $0x9b8] sm:$0xff]  ;;  %v608_v22 = vld [vmem:[%s2460_s11 + $0x9e0] sm:$0xff] }
  0x7b   : > { %v842_v63 = vsel %vm670_vm1, %v517_v16, 0.0  ;;  %v1000_v0 = vadd.f32 %v999_v50, %v598_v39  ;;  %v1107_v1 = vadd.f32 %v1106_v21, %v1105_v52  ;;  %v841_v4 = vadd.f32 %v840_v41, %v514_v44  ;;  %v610_v27 = vld [vmem:[%s2460_s11 + $0x9f0] sm:$0xff]  ;;  %v611_v32 = vld [vmem:[%s2460_s11 + $0x9f8] sm:$0xff] }
  0x7c   : > { %v962_v6 = vadd.f32 %v961_v26, %v960_v42  ;;  %v1044_v46 = vadd.f32 %v1043_v58, %v599_v48  ;;  %v1110_v7 = vsel %vm723_vm0, %v594_v47, 0.0  ;;  %v885_v11 = vadd.f32 %v884_v49, %v515_v54  ;;  %v606_v31 = vld [vmem:[%s2460_s11 + $0x9d0] sm:$0xff]  ;;  %v519_v38 = vld [vmem:[%s2460_s11 + $0x718] sm:$0x7]  ;;  %v609_v42 = vld [vmem:[%s2460_s11 + $0x9e8] sm:$0xff] }
  0x7d   : > { %v963_v12 = vsel %vm723_vm0, %v513_v53, 0.0  ;;  %v1001_v13 = vadd.f32 %v1000_v0, %v601_v55  ;;  %v1109_v14 = vadd.f32 %v1108_v60, %v1107_v1  ;;  %v672_v17 = vadd.f32 %v2832_v10, %v669_v37  ;;  %v614_v43 = vld [vmem:[%s2460_s11 + $0xa10] sm:$0xff]  ;;  %v616_v49 = vld [vmem:[%s2460_s11 + $0xa20] sm:$0xff]  ;;  %v617_v55 = vld [vmem:[%s2460_s11 + $0xa28] sm:$0xff] }
  0x7e   : > { %v886_v18 = vsel %vm670_vm1, %v518_v8, 0.0  ;;  %v1045_v19 = vadd.f32 %v1044_v46, %v602_v61  ;;  %v1112_v45 = vsel %vm723_vm0, %v597_v59, 0.0  ;;  %v716_v23 = vadd.f32 %v2851_v40, %v714_v62  ;;  %v612_v54 = vld [vmem:[%s2460_s11 + $0xa00] sm:$0xff]  ;;  %v615_v62 = vld [vmem:[%s2460_s11 + $0xa18] sm:$0xff] }
  0x7f   : > { %v796_v24 = vadd.f32 %v2870_v5, %v794_v57  ;;  %v1002_v9 = vadd.f32 %v1001_v13, %v604_v3  ;;  %v1111_v25 = vadd.f32 %v1110_v7, %v1109_v14  ;;  %v843_v28 = vadd.f32 %v842_v63, %v841_v4  ;;  %v613_v5 = vld [vmem:[%s2460_s11 + $0xa08] sm:$0xff]  ;;  %v620_v63 = vld [vmem:[%s2460_s11 + $0xa40] sm:$0xff]  ;;  %v622_v4 = vld [vmem:[%s2460_s11 + $0xa50] sm:$0xff] }
  0x80   : > { %v964_v10 = vadd.f32 %v963_v12, %v962_v6  ;;  %v1046_v29 = vadd.f32 %v1045_v19, %v605_v51  ;;  %v1114_v30 = vsel %vm723_vm0, %v600_v2, 0.0  ;;  %v887_v33 = vadd.f32 %v886_v18, %v885_v11  ;;  %v618_v51 = vld [vmem:[%s2460_s11 + $0xa30] sm:$0xff]  ;;  %v623_v11 = vld [vmem:[%s2460_s11 + $0xa58] sm:$0xff] }
  0x81   : > { %v965_v35 = vsel %vm723_vm0, %v516_v15, 0.0  ;;  %v1003_v40 = vadd.f32 %v1002_v9, %v607_v56  ;;  %v1113_v36 = vadd.f32 %v1112_v45, %v1111_v25  ;;  %v673_v16 = vrot.slane %v672_v17, 4  ;;  %v625_v56 = vld [vmem:[%s2460_s11 + $0xa68] sm:$0xff]  ;;  %v628_v25 = vld [vmem:[%s2460_s11 + $0xa80] sm:$0xff] }
  0x82   : > { %v1047_v39 = vadd.f32 %v1046_v29, %v608_v22  ;;  %v1116_v41 = vsel %vm723_vm0, %v603_v20, 0.0  ;;  %v717_v21 = vrot.slane %v716_v23, 4  ;;  %v799_v44 = vadd.f32 %v2889_v34, %v796_v24  ;;  %v619_v34 = vld [vmem:[%s2460_s11 + $0xa38] sm:$0xff]  ;;  %v621_v45 = vld [vmem:[%s2460_s11 + $0xa48] sm:$0xff]  ;;  %v626_v20 = vld [vmem:[%s2460_s11 + $0xa70] sm:$0xff] }
  0x83   : > { %v1004_v47 = vadd.f32 %v1003_v40, %v610_v27  ;;  %v1115_v48 = vadd.f32 %v1114_v30, %v1113_v36  ;;  %v844_v26 = vrot.slane %v843_v28, 4  ;;  %v966_v50 = vadd.f32 %v965_v35, %v964_v10  ;;  %v631_v22 = vld [vmem:[%s2460_s11 + $0xa98] sm:$0x7]  ;;  %v632_v27 = vld [vmem:[%s2460_s11 + $0xaa0] sm:$0x7] }
  0x84   : > { %v1048_v52 = vadd.f32 %v1047_v39, %v611_v32  ;;  %v1118_v53 = vsel %vm723_vm0, %v606_v31, 0.0  ;;  %v888_v37 = vrot.slane %v887_v33, 4  ;;  %v967_v57 = vsel %vm797_vm2, %v519_v38, 0.0  ;;  %v624_v31 = vld [vmem:[%s2460_s11 + $0xa60] sm:$0xff]  ;;  %v629_v32 = vld [vmem:[%s2460_s11 + $0xa88] sm:$0xff] }
  0x85   : > { %v1005_v58 = vadd.f32 %v1004_v47, %v613_v5  ;;  %v1117_v60 = vadd.f32 %v1116_v41, %v1115_v48  ;;  %v674_v8 = vadd.f32 %v673_v16, %v672_v17  ;;  %v1120_v61 = vsel %vm723_vm0, %v609_v42, 0.0  ;;  %v627_v41 = vld [vmem:[%s2460_s11 + $0xa78] sm:$0xff] }
  0x86   : > { %v1049_v59 = vadd.f32 %v1048_v52, %v614_v43  ;;  %v718_v0 = vadd.f32 %v717_v21, %v716_v23  ;;  %v845_v6 = vadd.f32 %v844_v26, %v843_v28  ;;  %v968_v46 = vadd.f32 %v967_v57, %v966_v50  ;;  %v630_v50 = vld [vmem:[%s2460_s11 + $0xa90] sm:$0xff] }
  0x87   : > { %v1006_v1 = vadd.f32 %v1005_v58, %v616_v49  ;;  %v1119_v3 = vadd.f32 %v1118_v53, %v1117_v60  ;;  %v1122_v2 = vsel %vm723_vm0, %v612_v54, 0.0  ;;  %v800_v12 = vrot.slane %v799_v44, 4  ;;  %v633_v58 = vld [vmem:[%s2460_s11 + $0xaa8] sm:$0x7] }
  0x88   : > { %v1050_v7 = vadd.f32 %v1049_v59, %v617_v55  ;;  %v889_v13 = vadd.f32 %v888_v37, %v887_v33  ;;  %v675_v17 = vrot.slane %v674_v8, 2  ;;  %v1124_v19 = vsel %vm723_vm0, %v615_v62, 0.0 }
  0x89   : > { %v1007_v14 = vadd.f32 %v1006_v1, %v619_v34  ;;  %v1121_v15 = vadd.f32 %v1120_v61, %v1119_v3  ;;  %v719_v23 = vrot.slane %v718_v0, 2  ;;  %v846_v28 = vrot.slane %v845_v6, 2 }
  0x8a   : > { %v1051_v18 = vadd.f32 %v1050_v7, %v620_v63  ;;  %v969_v10 = vrot.slane %v968_v46, 4  ;;  %v1126_v30 = vsel %vm723_vm0, %v618_v51, 0.0  ;;  %v801_v33 = vadd.f32 %v800_v12, %v799_v44 }
  0x8b   : > { %v1008_v24 = vadd.f32 %v1007_v14, %v622_v4  ;;  %v1123_v9 = vadd.f32 %v1122_v2, %v1121_v15  ;;  %v890_v35 = vrot.slane %v889_v13, 2  ;;  %v676_v38 = vadd.f32 %v675_v17, %v674_v8 }
  0x8c   : > { %v1052_v29 = vadd.f32 %v1051_v18, %v623_v11  ;;  %v1011_v5 = vsel %vm670_vm1, %v631_v22, 0.0  ;;  %v1128_v39 = vsel %vm723_vm0, %v621_v45, 0.0  ;;  %v720_v42 = vadd.f32 %v719_v23, %v718_v0 }
  0x8d   : > { %v1009_v40 = vadd.f32 %v1008_v24, %v625_v56  ;;  %v1125_v36 = vadd.f32 %v1124_v19, %v1123_v9  ;;  %v1055_v21 = vsel %vm670_vm1, %v632_v27, 0.0  ;;  %v847_v48 = vadd.f32 %v846_v28, %v845_v6 }
  0x8e   : > { %v1053_v16 = vadd.f32 %v1052_v29, %v626_v20  ;;  %v970_v49 = vadd.f32 %v969_v10, %v968_v46  ;;  %v1130_v26 = vsel %vm723_vm0, %v624_v31, 0.0  ;;  %v891_v52 = vadd.f32 %v890_v35, %v889_v13 }
  0x8f   : > { %v1010_v43 = vadd.f32 %v1009_v40, %v628_v25  ;;  %v1127_v47 = vadd.f32 %v1126_v30, %v1125_v36  ;;  %v802_v55 = vrot.slane %v801_v33, 2  ;;  %v1132_v57 = vsel %vm723_vm0, %v627_v41, 0.0 }
  0x90   : > { %v1054_v44 = vadd.f32 %v1053_v16, %v629_v32  ;;  %v677_v60 = vrot.slane %v676_v38, 1  ;;  %v721_v34 = vrot.slane %v720_v42, 1  ;;  %v848_v61 = vrot.slane %v847_v48, 1 }
  0x91   : > { %v1012_v53 = vadd.f32 %v1011_v5, %v1010_v43  ;;  %v1129_v54 = vadd.f32 %v1128_v39, %v1127_v47  ;;  %v971_v62 = vrot.slane %v970_v49, 2  ;;  %v1134_v0 = vsel %vm723_vm0, %v630_v50, 0.0 }
  0x92   : > { %v1056_v37 = vadd.f32 %v1055_v21, %v1054_v44  ;;  %v892_v1 = vrot.slane %v891_v52, 1  ;;  %v1136_v46 = vsel %vm797_vm2, %v633_v58, 0.0  ;;  %v678_v7 = vadd.f32 %v677_v60, %v676_v38 }
  0x93   : > { %v1013_v8 = vrot.slane %v1012_v53, 4  ;;  %v1131_v59 = vadd.f32 %v1130_v26, %v1129_v54  ;;  %v803_v2 = vadd.f32 %v802_v55, %v801_v33  ;;  %v722_v12 = vadd.f32 %v721_v34, %v720_v42 }
  0x94   : > { %v1057_v63 = vrot.slane %v1056_v37, 4  ;;  %v849_v13 = vadd.f32 %v848_v61, %v847_v48  ;;  %v972_v14 = vadd.f32 %v971_v62, %v970_v49  ;;  %v893_v56 = vadd.f32 %v892_v1, %v891_v52 }
  0x95   : > { %v1014_v3 = vadd.f32 %v1013_v8, %v1012_v53  ;;  %v1133_v4 = vadd.f32 %v1132_v57, %v1131_v59  ;;  %v804_v45 = vrot.slane %v803_v2, 1  ;;  %v1172_v21 = vlaneseq }
  0x96   : > { %v1058_v6 = vadd.f32 %v1057_v63, %v1056_v37  ;;  %v973_v23 = vrot.slane %v972_v14, 1  ;;  %v1154_v9 = vsel %vm1153_vm3, %v849_v13, %v678_v7  ;;  %v1157_v28 = vsel %vm1153_vm3, %v893_v56, %v722_v12 }
  0x97   : > { %v1015_v51 = vrot.slane %v1014_v3, 2  ;;  %v1135_v11 = vadd.f32 %v1134_v0, %v1133_v4  ;;  %v805_v31 = vadd.f32 %v804_v45, %v803_v2  ;;  %v1173_v47 = vand.u32 127, %v1172_v21 }
  0x98   : > { %v1059_v15 = vrot.slane %v1058_v6, 2  ;;  %v974_v32 = vadd.f32 %v973_v23, %v972_v14  ;;  %v2975_v48 = vshrl.u32 %v1172_v21, 7 }
  0x99   : > { %v1016_v17 = vadd.f32 %v1015_v51, %v1014_v3  ;;  %v1137_v18 = vadd.f32 %v1136_v46, %v1135_v11 }
  0x9a   : > { %v1060_v19 = vadd.f32 %v1059_v15, %v1058_v6  ;;  %v1159_v5 = vsel %vm1153_vm3, %v974_v32, %v805_v31  ;;  %4003 = vst [vmem:[#allocation8_spill] sm:$0xff] %v2975_v48  ;;  %v1176_v49 = vsub.s32 %v1173_v47, %v2975_v48 }
  0x9b   : > { %v1017_v20 = vrot.slane %v1016_v17, 1  ;;  %v1138_v22 = vrot.slane %v1137_v18, 4 }
  0x9c   : > { %v1061_v24 = vrot.slane %v1060_v19, 1 }
  0x9d   : > { %v1018_v25 = vadd.f32 %v1017_v20, %v1016_v17  ;;  %v1139_v27 = vadd.f32 %v1138_v22, %v1137_v18 }
  0x9e   : > { %v1062_v10 = vadd.f32 %v1061_v24, %v1060_v19 }
  0x9f   : > { %v1140_v29 = vrot.slane %v1139_v27, 2  ;;  %v1156_v30 = vsel %vm1155_vm4, %v1018_v25, %v1154_v9 }
  0xa0   : > { %v1158_v33 = vsel %vm1155_vm4, %v1062_v10, %v1157_v28  ;;  %v1164_v40 = vsel %vm670_vm1, %v1156_v30, 0.0 }
  0xa1   : > { %v1141_v35 = vadd.f32 %v1140_v29, %v1139_v27  ;;  %v1165_v36 = vsel %vm670_vm1, %v1158_v33, 0.0 }
  0xa2   : > { %v1166_v39 = vadd.f32 %v1165_v36, %v1164_v40 }
  0xa3   : > { %v1142_v38 = vrot.slane %v1141_v35, 1 }
  0xa5   : > { %v1143_v16 = vadd.f32 %v1142_v38, %v1141_v35 }
  0xa7   : > { %v1160_v41 = vsel %vm1155_vm4, %v1143_v16, %v1159_v5 }
  0xa8   : > { %v1167_v42 = vsel %vm797_vm2, %v1160_v41, 0.0 }
  0xa9   : > { %v1168_v43 = vadd.f32 %v1167_v42, %v1166_v39 }
  0xab   : > { %1169 = vadd.xlane.f32.xlu0 %v1168_v43 }
 0x133   : > { %1185 = sbr.rel (%p2309_p4) target bundleno = 1490 (0x5d2), region = 56 }
 0x134   : > { %v1170_v44 = vpop.xlane.xlu0 %1169 }
 0x135   : > { %v1177_v26 = vrot.slane %v1170_v44, %v1176_v49 }
 0x137   : > { %2321 = vst.msk [vmem:[%s2319_s12 - $0x1] sm:$0x1] %vm1180_vm5, %v1177_v26 }
 0x138   : > { %v1188_v50 = vld [vmem:[%s3984_s1] sm:$0x77]  ;;  %v3992_v54 = vmov 0.0   ;;  %v1343_v37 = vld [vmem:[%s3986_s3 + $0x1e8] sm:$0xff]  ;;  %vm1203_vm6 = vcmask 23552   ;;  %v1345_v58 = vld [vmem:[%s3986_s3 + $0x1f8] sm:$0xff] }
 0x139   : > { %v1202_v53 = vcombine.high %v1188_v50, %v1188_v50  ;;  %1275 = vmatprep.mubr.f32.mxu0 %v3992_v54  ;;  %v1342_v57 = vld [vmem:[%s3986_s3 + $0x1e0] sm:$0xff]  ;;  %1432 = vmatprep.subr.mxu1 %v1343_v37  ;;  %v1339_v60 = vld [vmem:[%s3986_s3 + $0x1c8] sm:$0xff]  ;;  %v1344_v34 = vld [vmem:[%s3986_s3 + $0x1f0] sm:$0xff]  ;;  %vm2237_vm7 = vcmask 1041408   ;;  %vm2254_vm8 = vcmask 0  }
 0x13a   : > { %1433 = vmatpush1.msra.mxu1 %v1342_v57  ;;  %v1338_v8 = vld [vmem:[%s3986_s3 + $0x1c0] sm:$0xff]  ;;  %v1341_v59 = vld [vmem:[%s3986_s3 + $0x1d8] sm:$0xff]  ;;  %v1335_v61 = vld [vmem:[%s3986_s3 + $0x1a8] sm:$0xff] }
 0x13b   : > { %2310 = vmatprep.subr.msk.mxu0 %vm670_vm1, %v1202_v53  ;;  %1434 = vmatprep.subr.mxu1 %v1339_v60  ;;  %v1340_v62 = vld [vmem:[%s3986_s3 + $0x1d0] sm:$0xff]  ;;  %v1334_v63 = vld [vmem:[%s3986_s3 + $0x1a0] sm:$0xff]  ;;  %v1337_v0 = vld [vmem:[%s3986_s3 + $0x1b8] sm:$0xff] }
 0x13c   : > { %2311 = vmatpush1.msk.msra.mxu0 %vm670_vm1, %v1188_v50  ;;  %1435 = vmatpush1.msra.mxu1 %v1338_v8  ;;  %v1331_v1 = vld [vmem:[%s3986_s3 + $0x188] sm:$0xff]  ;;  %v1336_v3 = vld [vmem:[%s3986_s3 + $0x1b0] sm:$0xff]  ;;  %v1330_v4 = vld [vmem:[%s3986_s3 + $0x180] sm:$0xff] }
 0x13d   : > { %1503 = vmatprep.subr.mxu0 %v1345_v58  ;;  %1436 = vmatprep.subr.mxu1 %v1335_v61  ;;  %v1333_v6 = vld [vmem:[%s3986_s3 + $0x198] sm:$0xff]  ;;  %v1327_v46 = vld [vmem:[%s3986_s3 + $0x168] sm:$0xff]  ;;  %v1332_v7 = vld [vmem:[%s3986_s3 + $0x190] sm:$0xff] }
 0x13e   : > { %v1186_v52 = vld [vmem:[#allocation2] sm:$0x3]  ;;  %1437 = vmatpush1.msra.mxu1 %v1334_v63  ;;  %v1329_v51 = vld [vmem:[%s3986_s3 + $0x178] sm:$0xff]  ;;  %v1323_v11 = vld [vmem:[%s3986_s3 + $0x148] sm:$0xff] }
 0x13f   : > { %v1187_v55 = vmul.f32 1.1185557e-05, %v1186_v52  ;;  %1438 = vmatprep.subr.mxu1 %v1331_v1  ;;  %v1326_v2 = vld [vmem:[%s3986_s3 + $0x160] sm:$0xff]  ;;  %v1328_v12 = vld [vmem:[%s3986_s3 + $0x170] sm:$0xff]  ;;  %v1325_v14 = vld [vmem:[%s3986_s3 + $0x158] sm:$0xff] }
 0x140   : > { %1439 = vmatpush1.msra.mxu1 %v1330_v4  ;;  %v1322_v13 = vld [vmem:[%s3986_s3 + $0x140] sm:$0xff]  ;;  %v1319_v15 = vld [vmem:[%s3986_s3 + $0x128] sm:$0xff]  ;;  %v1324_v56 = vld [vmem:[%s3986_s3 + $0x150] sm:$0xff] }
 0x141   : > { %2312 = vmatmul.mubr.msk.f32.vlgmr.msra.gmra.mxu0 %vm1203_vm6, %v1187_v55  ;;  %1440 = vmatprep.subr.mxu1 %v1327_v46  ;;  %v1318_v17 = vld [vmem:[%s3986_s3 + $0x120] sm:$0xff]  ;;  %v1321_v18 = vld [vmem:[%s3986_s3 + $0x138] sm:$0xff]  ;;  %v1315_v19 = vld [vmem:[%s3986_s3 + $0x108] sm:$0xff] }
 0x142   : > { %1504 = vmatpush1.msra.mxu0 %v1344_v34  ;;  %1441 = vmatpush1.msra.mxu1 %v1326_v2  ;;  %v1320_v45 = vld [vmem:[%s3986_s3 + $0x130] sm:$0xff]  ;;  %v1314_v20 = vld [vmem:[%s3986_s3 + $0x100] sm:$0xff]  ;;  %v1317_v22 = vld [vmem:[%s3986_s3 + $0x118] sm:$0xff] }
 0x143   : > { %1505 = vmatprep.subr.mxu0 %v1341_v59  ;;  %1442 = vmatprep.subr.mxu1 %v1323_v11  ;;  %v1311_v23 = vld [vmem:[%s3986_s3 + $0xe8] sm:$0xff]  ;;  %v1316_v24 = vld [vmem:[%s3986_s3 + $0x110] sm:$0xff]  ;;  %v1310_v9 = vld [vmem:[%s3986_s3 + $0xe0] sm:$0xff] }
 0x144   : > { %1506 = vmatpush1.msra.mxu0 %v1340_v62  ;;  %1443 = vmatpush1.msra.mxu1 %v1322_v13  ;;  %v1313_v25 = vld [vmem:[%s3986_s3 + $0xf8] sm:$0xff]  ;;  %v1307_v27 = vld [vmem:[%s3986_s3 + $0xc8] sm:$0xff]  ;;  %v1312_v28 = vld [vmem:[%s3986_s3 + $0xf0] sm:$0xff] }
 0x145   : > { %1507 = vmatprep.subr.mxu0 %v1337_v0  ;;  %1444 = vmatprep.subr.mxu1 %v1319_v15  ;;  %v1306_v10 = vld [vmem:[%s3986_s3 + $0xc0] sm:$0xff]  ;;  %v1309_v29 = vld [vmem:[%s3986_s3 + $0xd8] sm:$0xff]  ;;  %v1303_v30 = vld [vmem:[%s3986_s3 + $0xa8] sm:$0xff] }
 0x146   : > { %1508 = vmatpush1.msra.mxu0 %v1336_v3  ;;  %1445 = vmatpush1.msra.mxu1 %v1318_v17  ;;  %v1308_v31 = vld [vmem:[%s3986_s3 + $0xd0] sm:$0xff]  ;;  %v1302_v32 = vld [vmem:[%s3986_s3 + $0xa0] sm:$0xff]  ;;  %v1305_v33 = vld [vmem:[%s3986_s3 + $0xb8] sm:$0xff] }
 0x147   : > { %1509 = vmatprep.subr.mxu0 %v1333_v6  ;;  %1446 = vmatprep.subr.mxu1 %v1315_v19  ;;  %v1299_v35 = vld [vmem:[%s3986_s3 + $0x88] sm:$0xff]  ;;  %v1304_v40 = vld [vmem:[%s3986_s3 + $0xb0] sm:$0xff]  ;;  %v1298_v36 = vld [vmem:[%s3986_s3 + $0x80] sm:$0xff] }
 0x148   : > { %1510 = vmatpush1.msra.mxu0 %v1332_v7  ;;  %1447 = vmatpush1.msra.mxu1 %v1314_v20  ;;  %v1301_v38 = vld [vmem:[%s3986_s3 + $0x98] sm:$0xff]  ;;  %v1295_v5 = vld [vmem:[%s3986_s3 + $0x68] sm:$0xff]  ;;  %v1300_v16 = vld [vmem:[%s3986_s3 + $0x90] sm:$0xff] }
 0x149   : > { %1511 = vmatprep.subr.mxu0 %v1329_v51  ;;  %1448 = vmatprep.subr.mxu1 %v1311_v23  ;;  %v1294_v39 = vld [vmem:[%s3986_s3 + $0x60] sm:$0xff]  ;;  %v1297_v41 = vld [vmem:[%s3986_s3 + $0x78] sm:$0xff]  ;;  %v1291_v42 = vld [vmem:[%s3986_s3 + $0x48] sm:$0xff] }
 0x14a   : > { %1512 = vmatpush1.msra.mxu0 %v1328_v12  ;;  %1449 = vmatpush1.msra.mxu1 %v1310_v9  ;;  %v1296_v43 = vld [vmem:[%s3986_s3 + $0x70] sm:$0xff]  ;;  %v1290_v21 = vld [vmem:[%s3986_s3 + $0x40] sm:$0xff]  ;;  %v1293_v47 = vld [vmem:[%s3986_s3 + $0x58] sm:$0xff] }
 0x14b   : > { %1513 = vmatprep.subr.mxu0 %v1325_v14  ;;  %1450 = vmatprep.subr.mxu1 %v1307_v27  ;;  %v1287_v49 = vld [vmem:[%s3986_s3 + $0x28] sm:$0xff]  ;;  %v1292_v44 = vld [vmem:[%s3986_s3 + $0x50] sm:$0xff]  ;;  %v1286_v26 = vld [vmem:[%s3986_s3 + $0x20] sm:$0xff] }
 0x14c   : > { %1514 = vmatpush1.msra.mxu0 %v1324_v56  ;;  %1451 = vmatpush1.msra.mxu1 %v1306_v10  ;;  %v1289_v50 = vld [vmem:[%s3986_s3 + $0x38] sm:$0xff]  ;;  %v1283_v52 = vld [vmem:[%s3986_s3 + $0x8] sm:$0xff]  ;;  %v1288_v53 = vld [vmem:[%s3986_s3 + $0x30] sm:$0xff] }
 0x14d   : > { %1515 = vmatprep.subr.mxu0 %v1321_v18  ;;  %1452 = vmatprep.subr.mxu1 %v1303_v30  ;;  %v1282_v55 = vld [vmem:[%s3986_s3] sm:$0xff]  ;;  %v1285_v37 = vld [vmem:[%s3986_s3 + $0x18] sm:$0xff]  ;;  %v1407_v57 = vld [vmem:[%s3986_s3 + $0x3e8] sm:$0xff] }
 0x14e   : > { %1516 = vmatpush1.msra.mxu0 %v1320_v45  ;;  %1453 = vmatpush1.msra.mxu1 %v1302_v32  ;;  %v1284_v58 = vld [vmem:[%s3986_s3 + $0x10] sm:$0xff]  ;;  %v1406_v60 = vld [vmem:[%s3986_s3 + $0x3e0] sm:$0xff]  ;;  %v1409_v34 = vld [vmem:[%s3986_s3 + $0x3f8] sm:$0xff] }
 0x14f   : > { %1517 = vmatprep.subr.mxu0 %v1317_v22  ;;  %1454 = vmatprep.subr.mxu1 %v1299_v35  ;;  %v1403_v8 = vld [vmem:[%s3986_s3 + $0x3c8] sm:$0xff]  ;;  %v1408_v59 = vld [vmem:[%s3986_s3 + $0x3f0] sm:$0xff]  ;;  %v1402_v61 = vld [vmem:[%s3986_s3 + $0x3c0] sm:$0xff] }
 0x150   : > { %1518 = vmatpush1.msra.mxu0 %v1316_v24  ;;  %1455 = vmatpush1.msra.mxu1 %v1298_v36  ;;  %v1405_v62 = vld [vmem:[%s3986_s3 + $0x3d8] sm:$0xff]  ;;  %v1399_v63 = vld [vmem:[%s3986_s3 + $0x3a8] sm:$0xff]  ;;  %v1404_v0 = vld [vmem:[%s3986_s3 + $0x3d0] sm:$0xff] }
 0x151   : > { %1519 = vmatprep.subr.mxu0 %v1313_v25  ;;  %1456 = vmatprep.subr.mxu1 %v1295_v5  ;;  %v1398_v1 = vld [vmem:[%s3986_s3 + $0x3a0] sm:$0xff]  ;;  %v1401_v3 = vld [vmem:[%s3986_s3 + $0x3b8] sm:$0xff]  ;;  %v1395_v4 = vld [vmem:[%s3986_s3 + $0x388] sm:$0xff] }
 0x152   : > { %1520 = vmatpush1.msra.mxu0 %v1312_v28  ;;  %1457 = vmatpush1.msra.mxu1 %v1294_v39  ;;  %v1400_v6 = vld [vmem:[%s3986_s3 + $0x3b0] sm:$0xff]  ;;  %v1394_v46 = vld [vmem:[%s3986_s3 + $0x380] sm:$0xff]  ;;  %v1397_v7 = vld [vmem:[%s3986_s3 + $0x398] sm:$0xff] }
 0x153   : > { %1521 = vmatprep.subr.mxu0 %v1309_v29  ;;  %1458 = vmatprep.subr.mxu1 %v1291_v42  ;;  %v1391_v2 = vld [vmem:[%s3986_s3 + $0x368] sm:$0xff]  ;;  %v1396_v51 = vld [vmem:[%s3986_s3 + $0x390] sm:$0xff]  ;;  %v1390_v11 = vld [vmem:[%s3986_s3 + $0x360] sm:$0xff] }
 0x154   : > { %1522 = vmatpush1.msra.mxu0 %v1308_v31  ;;  %1459 = vmatpush1.msra.mxu1 %v1290_v21  ;;  %v1393_v12 = vld [vmem:[%s3986_s3 + $0x378] sm:$0xff]  ;;  %v1387_v13 = vld [vmem:[%s3986_s3 + $0x348] sm:$0xff]  ;;  %v1392_v14 = vld [vmem:[%s3986_s3 + $0x370] sm:$0xff] }
 0x155   : > { %1523 = vmatprep.subr.mxu0 %v1305_v33  ;;  %1460 = vmatprep.subr.mxu1 %v1287_v49  ;;  %v1386_v15 = vld [vmem:[%s3986_s3 + $0x340] sm:$0xff]  ;;  %v1389_v56 = vld [vmem:[%s3986_s3 + $0x358] sm:$0xff]  ;;  %v1383_v17 = vld [vmem:[%s3986_s3 + $0x328] sm:$0xff] }
 0x156   : > { %1524 = vmatpush1.msra.mxu0 %v1304_v40  ;;  %1461 = vmatpush1.msra.mxu1 %v1286_v26  ;;  %v1388_v18 = vld [vmem:[%s3986_s3 + $0x350] sm:$0xff]  ;;  %v1382_v19 = vld [vmem:[%s3986_s3 + $0x320] sm:$0xff]  ;;  %v1385_v45 = vld [vmem:[%s3986_s3 + $0x338] sm:$0xff] }
 0x157   : > { %1525 = vmatprep.subr.mxu0 %v1301_v38  ;;  %1462 = vmatprep.subr.mxu1 %v1283_v52  ;;  %v1379_v20 = vld [vmem:[%s3986_s3 + $0x308] sm:$0xff]  ;;  %v1384_v22 = vld [vmem:[%s3986_s3 + $0x330] sm:$0xff]  ;;  %v1378_v23 = vld [vmem:[%s3986_s3 + $0x300] sm:$0xff] }
 0x158   : > { %1526 = vmatpush1.msra.mxu0 %v1300_v16  ;;  %1463 = vmatpush1.msra.mxu1 %v1282_v55  ;;  %v1381_v24 = vld [vmem:[%s3986_s3 + $0x318] sm:$0xff]  ;;  %v1375_v9 = vld [vmem:[%s3986_s3 + $0x2e8] sm:$0xff]  ;;  %v1380_v25 = vld [vmem:[%s3986_s3 + $0x310] sm:$0xff] }
 0x159   : > { %1527 = vmatprep.subr.mxu0 %v1297_v41  ;;  %1464 = vmatprep.subr.mxu1 %v1407_v57  ;;  %v1374_v27 = vld [vmem:[%s3986_s3 + $0x2e0] sm:$0xff]  ;;  %v1377_v28 = vld [vmem:[%s3986_s3 + $0x2f8] sm:$0xff]  ;;  %v1371_v10 = vld [vmem:[%s3986_s3 + $0x2c8] sm:$0xff] }
 0x15a   : > { %1528 = vmatpush1.msra.mxu0 %v1296_v43  ;;  %1465 = vmatpush2.msra.mxu1 %v1406_v60  ;;  %v1376_v29 = vld [vmem:[%s3986_s3 + $0x2f0] sm:$0xff]  ;;  %v1370_v30 = vld [vmem:[%s3986_s3 + $0x2c0] sm:$0xff]  ;;  %v1373_v31 = vld [vmem:[%s3986_s3 + $0x2d8] sm:$0xff] }
 0x15b   : > { %1529 = vmatprep.subr.mxu0 %v1293_v47  ;;  %1466 = vmatprep.subr.mxu1 %v1403_v8  ;;  %v1367_v32 = vld [vmem:[%s3986_s3 + $0x2a8] sm:$0xff]  ;;  %v1372_v33 = vld [vmem:[%s3986_s3 + $0x2d0] sm:$0xff]  ;;  %v1366_v35 = vld [vmem:[%s3986_s3 + $0x2a0] sm:$0xff] }
 0x15c   : > { %1530 = vmatpush1.msra.mxu0 %v1292_v44  ;;  %1467 = vmatpush2.msra.mxu1 %v1402_v61  ;;  %v1369_v40 = vld [vmem:[%s3986_s3 + $0x2b8] sm:$0xff]  ;;  %v1363_v36 = vld [vmem:[%s3986_s3 + $0x288] sm:$0xff]  ;;  %v1368_v38 = vld [vmem:[%s3986_s3 + $0x2b0] sm:$0xff]  ;;  %v3386_v61 = vsub.s32 0, %v2975_v48 }
 0x15d   : > { %1531 = vmatprep.subr.mxu0 %v1289_v50  ;;  %1468 = vmatprep.subr.mxu1 %v1399_v63  ;;  %v1362_v5 = vld [vmem:[%s3986_s3 + $0x280] sm:$0xff]  ;;  %v1365_v16 = vld [vmem:[%s3986_s3 + $0x298] sm:$0xff]  ;;  %v1359_v39 = vld [vmem:[%s3986_s3 + $0x268] sm:$0xff] }
 0x15e   : > { %1532 = vmatpush1.msra.mxu0 %v1288_v53  ;;  %1469 = vmatpush2.msra.mxu1 %v1398_v1  ;;  %v1364_v41 = vld [vmem:[%s3986_s3 + $0x290] sm:$0xff]  ;;  %v1358_v42 = vld [vmem:[%s3986_s3 + $0x260] sm:$0xff]  ;;  %v1361_v43 = vld [vmem:[%s3986_s3 + $0x278] sm:$0xff]  ;;  %4005 = vst [vmem:[#allocation10_spill] sm:$0xff] %v3386_v61 }
 0x15f   : > { %1533 = vmatprep.subr.mxu0 %v1285_v37  ;;  %1470 = vmatprep.subr.mxu1 %v1395_v4  ;;  %v1355_v21 = vld [vmem:[%s3986_s3 + $0x248] sm:$0xff]  ;;  %v1360_v47 = vld [vmem:[%s3986_s3 + $0x270] sm:$0xff]  ;;  %v1357_v49 = vld [vmem:[%s3986_s3 + $0x258] sm:$0xff] }
 0x160   : > { %1534 = vmatpush1.msra.mxu0 %v1284_v58  ;;  %1471 = vmatpush2.msra.mxu1 %v1394_v46  ;;  %v1354_v44 = vld [vmem:[%s3986_s3 + $0x240] sm:$0xff]  ;;  %v1356_v26 = vld [vmem:[%s3986_s3 + $0x250] sm:$0xff]  ;;  %v1351_v50 = vld [vmem:[%s3986_s3 + $0x228] sm:$0xff] }
 0x161   : > { %1535 = vmatprep.subr.mxu0 %v1409_v34  ;;  %1472 = vmatprep.subr.mxu1 %v1391_v2  ;;  %v1353_v52 = vld [vmem:[%s3986_s3 + $0x238] sm:$0xff]  ;;  %v1350_v53 = vld [vmem:[%s3986_s3 + $0x220] sm:$0xff]  ;;  %v1352_v55 = vld [vmem:[%s3986_s3 + $0x230] sm:$0xff] }
 0x162   : > { %1536 = vmatpush2.msra.mxu0 %v1408_v59  ;;  %1473 = vmatpush2.msra.mxu1 %v1390_v11  ;;  %v1347_v37 = vld [vmem:[%s3986_s3 + $0x208] sm:$0xff]  ;;  %v1349_v57 = vld [vmem:[%s3986_s3 + $0x218] sm:$0xff]  ;;  %v1346_v58 = vld [vmem:[%s3986_s3 + $0x200] sm:$0xff]  ;;  %v3383_v59 = vsub.s32 1, %v2975_v48 }
 0x163   : > { %1537 = vmatprep.subr.mxu0 %v1405_v62  ;;  %1474 = vmatprep.subr.mxu1 %v1387_v13  ;;  %v1348_v60 = vld [vmem:[%s3986_s3 + $0x210] sm:$0xff]  ;;  %v3373_v34 = vld [vmem:[%s3987_s4 + $0x1e8] sm:$0xff]  ;;  %v3378_v8 = vld [vmem:[%s3987_s4 + $0x1f8] sm:$0xff] }
 0x164   : > { %1538 = vmatpush2.msra.mxu0 %v1404_v0  ;;  %1475 = vmatpush2.msra.mxu1 %v1386_v15  ;;  %4004 = vst [vmem:[#allocation9_spill] sm:$0xff] %v3383_v59  ;;  %v1189_v62 = vld [vmem:[%s3985_s2] sm:$0x3]  ;;  %v3412_v2 = vld [vmem:[%s3987_s4 + $0x1c8] sm:$0xff]  ;;  %v3767_v48 = vld [vmem:[%s3987_s4 + $0x10] sm:$0xff] }
 0x165   : > { %1539 = vmatprep.subr.mxu0 %v1401_v3  ;;  %1476 = vmatprep.subr.mxu1 %v1383_v17  ;;  %v1198_v63 = vrot.slane %v1189_v62, %v3383_v59  ;;  %v1194_v0 = vrot.slane %v1189_v62, %v3386_v61  ;;  %v3400_v46 = vld [vmem:[%s3987_s4 + $0x1e0] sm:$0xff]  ;;  %v3436_v13 = vld [vmem:[%s3987_s4 + $0x1a8] sm:$0xff]  ;;  %v3705_v62 = vld [vmem:[%s3987_s4 + $0x58] sm:$0xff] }
 0x166   : > { %1540 = vmatpush2.msra.mxu0 %v1400_v6  ;;  %1477 = vmatpush2.msra.mxu1 %v1382_v19  ;;  %v3424_v11 = vld [vmem:[%s3987_s4 + $0x1c0] sm:$0xff]  ;;  %v3460_v17 = vld [vmem:[%s3987_s4 + $0x188] sm:$0xff]  ;;  %v3753_v59 = vld [vmem:[%s3987_s4 + $0x18] sm:$0xff] }
 0x167   : > { %1541 = vmatprep.subr.mxu0 %v1397_v7  ;;  %1478 = vmatprep.subr.mxu1 %v1379_v20  ;;  %v3405_v7 = vld [vmem:[%s3987_s4 + $0x1f0] sm:$0xff]  ;;  %v3448_v15 = vld [vmem:[%s3987_s4 + $0x1a0] sm:$0xff]  ;;  %v3484_v20 = vld [vmem:[%s3987_s4 + $0x168] sm:$0xff] }
 0x168   : > { %1542 = vmatpush2.msra.mxu0 %v1396_v51  ;;  %1479 = vmatpush2.msra.mxu1 %v1378_v23  ;;  %v3417_v51 = vld [vmem:[%s3987_s4 + $0x1d8] sm:$0xff]  ;;  %v3472_v19 = vld [vmem:[%s3987_s4 + $0x180] sm:$0xff] }
 0x169   : > { %1543 = vmatprep.subr.mxu0 %v1393_v12  ;;  %1480 = vmatprep.subr.mxu1 %v1375_v9  ;;  %v3429_v12 = vld [vmem:[%s3987_s4 + $0x1d0] sm:$0xff]  ;;  %v3496_v23 = vld [vmem:[%s3987_s4 + $0x160] sm:$0xff]  ;;  %v3508_v9 = vld [vmem:[%s3987_s4 + $0x148] sm:$0xff] }
 0x16a   : > { %1544 = vmatpush2.msra.mxu0 %v1392_v14  ;;  %1481 = vmatpush2.msra.mxu1 %v1374_v27  ;;  %v3441_v14 = vld [vmem:[%s3987_s4 + $0x1b8] sm:$0xff]  ;;  %v3520_v27 = vld [vmem:[%s3987_s4 + $0x140] sm:$0xff] }
 0x16b   : > { %1545 = vmatprep.subr.mxu0 %v1389_v56  ;;  %1482 = vmatprep.subr.mxu1 %v1371_v10  ;;  %v3453_v56 = vld [vmem:[%s3987_s4 + $0x1b0] sm:$0xff]  ;;  %v3532_v10 = vld [vmem:[%s3987_s4 + $0x128] sm:$0xff]  ;;  %v3736_v54 = vld [vmem:[%s3987_s4 + $0x20] sm:$0xff] }
 0x16c   : > { %1546 = vmatpush2.msra.mxu0 %v1388_v18  ;;  %1483 = vmatpush2.msra.mxu1 %v1370_v30  ;;  %v3465_v18 = vld [vmem:[%s3987_s4 + $0x198] sm:$0xff]  ;;  %v3544_v30 = vld [vmem:[%s3987_s4 + $0x120] sm:$0xff] }
 0x16d   : > { %1547 = vmatprep.subr.mxu0 %v1385_v45  ;;  %1484 = vmatprep.subr.mxu1 %v1367_v32  ;;  %v3477_v45 = vld [vmem:[%s3987_s4 + $0x190] sm:$0xff]  ;;  %v3556_v32 = vld [vmem:[%s3987_s4 + $0x108] sm:$0xff]  ;;  %v3760_v61 = vld [vmem:[%s3987_s4] sm:$0xff] }
 0x16e   : > { %1548 = vmatpush2.msra.mxu0 %v1384_v22  ;;  %1485 = vmatpush2.msra.mxu1 %v1366_v35  ;;  %v3489_v22 = vld [vmem:[%s3987_s4 + $0x178] sm:$0xff]  ;;  %v3568_v35 = vld [vmem:[%s3987_s4 + $0x100] sm:$0xff] }
 0x16f   : > { %1549 = vmatprep.subr.mxu0 %v1381_v24  ;;  %1486 = vmatprep.subr.mxu1 %v1363_v36  ;;  %v3501_v24 = vld [vmem:[%s3987_s4 + $0x170] sm:$0xff]  ;;  %v3580_v36 = vld [vmem:[%s3987_s4 + $0xe8] sm:$0xff] }
 0x170   : > { %1550 = vmatpush2.msra.mxu0 %v1380_v25  ;;  %1487 = vmatpush2.msra.mxu1 %v1362_v5  ;;  %v3513_v25 = vld [vmem:[%s3987_s4 + $0x158] sm:$0xff]  ;;  %v3592_v5 = vld [vmem:[%s3987_s4 + $0xe0] sm:$0xff] }
 0x171   : > { %1551 = vmatprep.subr.mxu0 %v1377_v28  ;;  %1488 = vmatprep.subr.mxu1 %v1359_v39  ;;  %v3525_v28 = vld [vmem:[%s3987_s4 + $0x150] sm:$0xff]  ;;  %v3604_v39 = vld [vmem:[%s3987_s4 + $0xc8] sm:$0xff] }
 0x172   : > { %1552 = vmatpush2.msra.mxu0 %v1376_v29  ;;  %1489 = vmatpush2.msra.mxu1 %v1358_v42  ;;  %v3537_v29 = vld [vmem:[%s3987_s4 + $0x138] sm:$0xff]  ;;  %v3616_v42 = vld [vmem:[%s3987_s4 + $0xc0] sm:$0xff] }
 0x173   : > { %1553 = vmatprep.subr.mxu0 %v1373_v31  ;;  %1490 = vmatprep.subr.mxu1 %v1355_v21  ;;  %v3549_v31 = vld [vmem:[%s3987_s4 + $0x130] sm:$0xff]  ;;  %v3628_v21 = vld [vmem:[%s3987_s4 + $0xa8] sm:$0xff] }
 0x174   : > { %1554 = vmatpush2.msra.mxu0 %v1372_v33  ;;  %1491 = vmatpush2.msra.mxu1 %v1354_v44  ;;  %v3561_v33 = vld [vmem:[%s3987_s4 + $0x118] sm:$0xff]  ;;  %v3645_v44 = vld [vmem:[%s3987_s4 + $0xb0] sm:$0xff] }
 0x175   : > { %1555 = vmatprep.subr.mxu0 %v1369_v40  ;;  %1492 = vmatprep.subr.mxu1 %v1351_v50  ;;  %v3573_v40 = vld [vmem:[%s3987_s4 + $0x110] sm:$0xff]  ;;  %v3657_v50 = vld [vmem:[%s3987_s4 + $0x98] sm:$0xff] }
 0x176   : > { %1556 = vmatpush2.msra.mxu0 %v1368_v38  ;;  %1493 = vmatpush2.msra.mxu1 %v1350_v53  ;;  %v3585_v38 = vld [vmem:[%s3987_s4 + $0xf8] sm:$0xff]  ;;  %v3669_v53 = vld [vmem:[%s3987_s4 + $0x90] sm:$0xff] }
 0x177   : > { %1557 = vmatprep.subr.mxu0 %v1365_v16  ;;  %1494 = vmatprep.subr.mxu1 %v1347_v37  ;;  %v3597_v16 = vld [vmem:[%s3987_s4 + $0xf0] sm:$0xff]  ;;  %v3681_v37 = vld [vmem:[%s3987_s4 + $0x78] sm:$0xff] }
 0x178   : > { %1558 = vmatpush2.msra.mxu0 %v1364_v41  ;;  %1495 = vmatpush2.msra.mxu1 %v1346_v58  ;;  %v3609_v41 = vld [vmem:[%s3987_s4 + $0xd8] sm:$0xff]  ;;  %v3693_v58 = vld [vmem:[%s3987_s4 + $0x70] sm:$0xff] }
 0x179   : > { %1559 = vmatprep.subr.mxu0 %v1361_v43  ;;  %1662 = vmatprep.subr.mxu1 %v3373_v34  ;;  %v3621_v43 = vld [vmem:[%s3987_s4 + $0xd0] sm:$0xff] }
 0x17a   : > { %1560 = vmatpush2.msra.mxu0 %v1360_v47  ;;  %v3633_v47 = vld [vmem:[%s3987_s4 + $0xb8] sm:$0xff] }
 0x17b   : > { %1561 = vmatprep.subr.mxu0 %v1357_v49  ;;  %v3640_v49 = vld [vmem:[%s3987_s4 + $0xa0] sm:$0xff] }
 0x17c   : > { %1562 = vmatpush2.msra.mxu0 %v1356_v26  ;;  %v3652_v26 = vld [vmem:[%s3987_s4 + $0x88] sm:$0xff] }
 0x17d   : > { %1563 = vmatprep.subr.mxu0 %v1353_v52  ;;  %v3664_v52 = vld [vmem:[%s3987_s4 + $0x80] sm:$0xff] }
 0x17e   : > { %1564 = vmatpush2.msra.mxu0 %v1352_v55  ;;  %v3676_v55 = vld [vmem:[%s3987_s4 + $0x68] sm:$0xff] }
 0x17f   : > { %1565 = vmatprep.subr.mxu0 %v1349_v57  ;;  %v3688_v57 = vld [vmem:[%s3987_s4 + $0x60] sm:$0xff] }
 0x180   : > { %1566 = vmatpush2.msra.mxu0 %v1348_v60  ;;  %v3700_v60 = vld [vmem:[%s3987_s4 + $0x48] sm:$0xff] }
 0x181   : > { %1733 = vmatprep.subr.mxu0 %v3378_v8 }
 0x201   : > { %v1277_v1 = vpop.f32.mrf.mxu0 }
 0x202   : > { %v3395_v6 = vadd.f32 %v1277_v1, %v1194_v0  ;;  %v3717_v0 = vld [vmem:[%s3987_s4 + $0x50] sm:$0xff]  ;;  %v3724_v1 = vld [vmem:[%s3987_s4 + $0x28] sm:$0xff] }
 0x203   : > { %v1279_v3 = vpop.f32.mrf.mxu0 }
 0x204   : > { %v3393_v4 = vadd.f32 %v1279_v3, %v1198_v63  ;;  %4007 = vst [vmem:[#allocation12_spill] sm:$0xff] %v3395_v6  ;;  %v3712_v63 = vld [vmem:[%s3987_s4 + $0x40] sm:$0xff]  ;;  %v3729_v3 = vld [vmem:[%s3987_s4 + $0x38] sm:$0xff] }
 0x205   : > { %4008 = vst [vmem:[#allocation13_spill] sm:$0xff] %v3729_v3 }
 0x206   : > { %4006 = vst [vmem:[#allocation11_spill] sm:$0xff] %v3393_v4  ;;  %1496 = vmatprep.mubr.f32.mxu1 %v3393_v4  ;;  %1567 = vmatprep.mubr.f32.mxu0 %v3393_v4  ;;  %v3741_v4 = vld [vmem:[%s3987_s4 + $0x30] sm:$0xff] }
 0x207   : > { %1497 = vmatmul.mubr.f32.vlgmr.msra.gmra.mxu1 %v3395_v6  ;;  %1568 = vmatmul.mubr.f32.vlgmr.msra.gmra.mxu0 %v3395_v6  ;;  %v3748_v6 = vld [vmem:[%s3987_s4 + $0x8] sm:$0xff] }
 0x208   : > { %1663 = vmatpush1.msra.mxu1 %v3400_v46  ;;  %1734 = vmatpush1.msra.mxu0 %v3405_v7 }
 0x209   : > { %1664 = vmatprep.subr.mxu1 %v3412_v2  ;;  %1735 = vmatprep.subr.mxu0 %v3417_v51 }
 0x20a   : > { %1665 = vmatpush1.msra.mxu1 %v3424_v11  ;;  %1736 = vmatpush1.msra.mxu0 %v3429_v12 }
 0x20b   : > { %1666 = vmatprep.subr.mxu1 %v3436_v13  ;;  %1737 = vmatprep.subr.mxu0 %v3441_v14 }
 0x20c   : > { %1667 = vmatpush1.msra.mxu1 %v3448_v15  ;;  %1738 = vmatpush1.msra.mxu0 %v3453_v56 }
 0x20d   : > { %1668 = vmatprep.subr.mxu1 %v3460_v17  ;;  %1739 = vmatprep.subr.mxu0 %v3465_v18 }
 0x20e   : > { %1669 = vmatpush1.msra.mxu1 %v3472_v19  ;;  %1740 = vmatpush1.msra.mxu0 %v3477_v45 }
 0x20f   : > { %1670 = vmatprep.subr.mxu1 %v3484_v20  ;;  %1741 = vmatprep.subr.mxu0 %v3489_v22 }
 0x210   : > { %1671 = vmatpush1.msra.mxu1 %v3496_v23  ;;  %1742 = vmatpush1.msra.mxu0 %v3501_v24 }
 0x211   : > { %1672 = vmatprep.subr.mxu1 %v3508_v9  ;;  %1743 = vmatprep.subr.mxu0 %v3513_v25 }
 0x212   : > { %1673 = vmatpush1.msra.mxu1 %v3520_v27  ;;  %1744 = vmatpush1.msra.mxu0 %v3525_v28 }
 0x213   : > { %1674 = vmatprep.subr.mxu1 %v3532_v10  ;;  %1745 = vmatprep.subr.mxu0 %v3537_v29 }
 0x214   : > { %1675 = vmatpush1.msra.mxu1 %v3544_v30  ;;  %1746 = vmatpush1.msra.mxu0 %v3549_v31 }
 0x215   : > { %1676 = vmatprep.subr.mxu1 %v3556_v32  ;;  %1747 = vmatprep.subr.mxu0 %v3561_v33 }
 0x216   : > { %1677 = vmatpush1.msra.mxu1 %v3568_v35  ;;  %1748 = vmatpush1.msra.mxu0 %v3573_v40 }
 0x217   : > { %1678 = vmatprep.subr.mxu1 %v3580_v36  ;;  %1749 = vmatprep.subr.mxu0 %v3585_v38 }
 0x218   : > { %1679 = vmatpush1.msra.mxu1 %v3592_v5  ;;  %1750 = vmatpush1.msra.mxu0 %v3597_v16 }
 0x219   : > { %1680 = vmatprep.subr.mxu1 %v3604_v39  ;;  %1751 = vmatprep.subr.mxu0 %v3609_v41 }
 0x21a   : > { %1681 = vmatpush1.msra.mxu1 %v3616_v42  ;;  %1752 = vmatpush1.msra.mxu0 %v3621_v43 }
 0x21b   : > { %1682 = vmatprep.subr.mxu1 %v3628_v21  ;;  %1753 = vmatprep.subr.mxu0 %v3633_v47 }
 0x21c   : > { %1683 = vmatpush1.msra.mxu1 %v3640_v49  ;;  %1754 = vmatpush1.msra.mxu0 %v3645_v44 }
 0x21d   : > { %1684 = vmatprep.subr.mxu1 %v3652_v26  ;;  %1755 = vmatprep.subr.mxu0 %v3657_v50 }
 0x21e   : > { %1685 = vmatpush1.msra.mxu1 %v3664_v52  ;;  %1756 = vmatpush1.msra.mxu0 %v3669_v53 }
 0x21f   : > { %1686 = vmatprep.subr.mxu1 %v3676_v55  ;;  %1757 = vmatprep.subr.mxu0 %v3681_v37 }
 0x220   : > { %1687 = vmatpush1.msra.mxu1 %v3688_v57  ;;  %1758 = vmatpush1.msra.mxu0 %v3693_v58 }
 0x221   : > { %1688 = vmatprep.subr.mxu1 %v3700_v60  ;;  %1759 = vmatprep.subr.mxu0 %v3705_v62 }
 0x222   : > { %1689 = vmatpush1.msra.mxu1 %v3712_v63  ;;  %1760 = vmatpush1.msra.mxu0 %v3717_v0 }
 0x223   : > { %1690 = vmatprep.subr.mxu1 %v3724_v1  ;;  %1761 = vmatprep.subr.mxu0 %v3729_v3  ;;  %v4009_v3 = vmov 0.0  }
 0x224   : > { %1691 = vmatpush1.msra.mxu1 %v3736_v54  ;;  %1762 = vmatpush1.msra.mxu0 %v3741_v4 }
 0x225   : > { %1692 = vmatprep.subr.mxu1 %v3748_v6  ;;  %1763 = vmatprep.subr.mxu0 %v3753_v59 }
 0x226   : > { %1693 = vmatpush1.msra.mxu1 %v3760_v61  ;;  %1726 = vmatprep.mubr.f32.mxu1 %v4009_v3 }
 0x227   : > { %1764 = vmatpush1.msra.mxu0 %v3767_v48  ;;  %1797 = vmatprep.mubr.f32.mxu0 %v4009_v3 }
 0x228   : > { %1727 = vmatmul.mubr.f32.vlgmr.msra.gmra.mxu1 %v4009_v3  ;;  %1798 = vmatmul.mubr.f32.vlgmr.msra.gmra.mxu0 %v4009_v3 }
 0x229   : > { %1921 = vmatprep.subr.mxu1 %v3373_v34  ;;  %1992 = vmatprep.subr.mxu0 %v3378_v8  ;;  %v4010_v34 = vld [vmem:[#allocation13_spill] sm:$0xff]  ;;  %v2397_v8 = vmov 1983009808  }
 0x22a   : > { %1922 = vmatpush1.msra.mxu1 %v3400_v46  ;;  %1993 = vmatpush1.msra.mxu0 %v3405_v7  ;;  %v1581_v46 = vunpack.c.l.s4 %v2397_v8  ;;  %v4011_v7 = vld [vmem:[#allocation8_spill] sm:$0xff]  ;;  %v2139_v8 = vld [vmem:[%s3989_s6 + $0xb8] sm:$0xff] }
 0x22b   : > { %1923 = vmatprep.subr.mxu1 %v3412_v2  ;;  %1994 = vmatprep.subr.mxu0 %v3417_v51  ;;  %v1422_v2 = vsub.s32 2, %v4011_v7 }
 0x22c   : > { %1924 = vmatpush1.msra.mxu1 %v3424_v11  ;;  %1995 = vmatpush1.msra.mxu0 %v3429_v12  ;;  %v4013_v11 = vld [vmem:[#allocation9_spill] sm:$0xff] }
 0x22d   : > { %1925 = vmatprep.subr.mxu1 %v3436_v13  ;;  %1996 = vmatprep.subr.mxu0 %v3441_v14 }
 0x22e   : > { %1926 = vmatpush1.msra.mxu1 %v3448_v15  ;;  %1997 = vmatpush1.msra.mxu0 %v3453_v56 }
 0x22f   : > { %1927 = vmatprep.subr.mxu1 %v3460_v17  ;;  %1998 = vmatprep.subr.mxu0 %v3465_v18 }
 0x230   : > { %1928 = vmatpush1.msra.mxu1 %v3472_v19  ;;  %1999 = vmatpush1.msra.mxu0 %v3477_v45 }
 0x231   : > { %1929 = vmatprep.subr.mxu1 %v3484_v20  ;;  %2000 = vmatprep.subr.mxu0 %v3489_v22 }
 0x232   : > { %1930 = vmatpush1.msra.mxu1 %v3496_v23  ;;  %2001 = vmatpush1.msra.mxu0 %v3501_v24 }
 0x233   : > { %1931 = vmatprep.subr.mxu1 %v3508_v9  ;;  %2002 = vmatprep.subr.mxu0 %v3513_v25 }
 0x234   : > { %1932 = vmatpush1.msra.mxu1 %v3520_v27  ;;  %2003 = vmatpush1.msra.mxu0 %v3525_v28  ;;  %v2398_v27 = vmov 1966171168  }
 0x235   : > { %1933 = vmatprep.subr.mxu1 %v3532_v10  ;;  %2004 = vmatprep.subr.mxu0 %v3537_v29  ;;  %v1811_v28 = vunpack.c.l.s4 %v2398_v27 }
 0x236   : > { %1934 = vmatpush1.msra.mxu1 %v3544_v30  ;;  %2005 = vmatpush1.msra.mxu0 %v3549_v31 }
 0x237   : > { %1935 = vmatprep.subr.mxu1 %v3556_v32  ;;  %2006 = vmatprep.subr.mxu0 %v3561_v33  ;;  %v1812_v10 = vunpack.c.0.s8 %v1811_v28 }
 0x238   : > { %1936 = vmatpush1.msra.mxu1 %v3568_v35  ;;  %2007 = vmatpush1.msra.mxu0 %v3573_v40 }
 0x239   : > { %1937 = vmatprep.subr.mxu1 %v3580_v36  ;;  %2008 = vmatprep.subr.mxu0 %v3585_v38  ;;  %v3852_v31 = vsub.s32 %v1812_v10, %v4011_v7 }
 0x23a   : > { %1938 = vmatpush1.msra.mxu1 %v3592_v5  ;;  %2009 = vmatpush1.msra.mxu0 %v3597_v16 }
 0x23b   : > { %1939 = vmatprep.subr.mxu1 %v3604_v39  ;;  %2010 = vmatprep.subr.mxu0 %v3609_v41 }
 0x23c   : > { %1940 = vmatpush1.msra.mxu1 %v3616_v42  ;;  %2011 = vmatpush1.msra.mxu0 %v3621_v43 }
 0x23d   : > { %1941 = vmatprep.subr.mxu1 %v3628_v21  ;;  %2012 = vmatprep.subr.mxu0 %v3633_v47 }
 0x23e   : > { %1942 = vmatpush1.msra.mxu1 %v3640_v49  ;;  %2013 = vmatpush1.msra.mxu0 %v3645_v44 }
 0x23f   : > { %1943 = vmatprep.subr.mxu1 %v3652_v26  ;;  %2014 = vmatprep.subr.mxu0 %v3657_v50 }
 0x240   : > { %1944 = vmatpush1.msra.mxu1 %v3664_v52  ;;  %2015 = vmatpush1.msra.mxu0 %v3669_v53 }
 0x241   : > { %1945 = vmatprep.subr.mxu1 %v3676_v55  ;;  %2016 = vmatprep.subr.mxu0 %v3681_v37 }
 0x242   : > { %1946 = vmatpush1.msra.mxu1 %v3688_v57  ;;  %2017 = vmatpush1.msra.mxu0 %v3693_v58  ;;  %v2147_v58 = vld [vmem:[%s3989_s6 + $0xf8] sm:$0xff] }
 0x243   : > { %1947 = vmatprep.subr.mxu1 %v3700_v60  ;;  %2018 = vmatprep.subr.mxu0 %v3705_v62  ;;  %v2146_v60 = vld [vmem:[%s3989_s6 + $0xf0] sm:$0xff]  ;;  %v2145_v62 = vld [vmem:[%s3989_s6 + $0xe8] sm:$0xff] }
 0x244   : > { %1948 = vmatpush1.msra.mxu1 %v3712_v63  ;;  %2019 = vmatpush1.msra.mxu0 %v3717_v0  ;;  %v2144_v63 = vld [vmem:[%s3989_s6 + $0xe0] sm:$0xff]  ;;  %v2143_v0 = vld [vmem:[%s3989_s6 + $0xd8] sm:$0xff] }
 0x245   : > { %1949 = vmatprep.subr.mxu1 %v3724_v1  ;;  %2020 = vmatprep.subr.mxu0 %v4010_v34  ;;  %v2142_v1 = vld [vmem:[%s3989_s6 + $0xd0] sm:$0xff]  ;;  %v2140_v34 = vld [vmem:[%s3989_s6 + $0xc0] sm:$0xff] }
 0x246   : > { %1950 = vmatpush1.msra.mxu1 %v3736_v54  ;;  %2021 = vmatpush1.msra.mxu0 %v3741_v4  ;;  %v1426_v54 = vsub.s32 3, %v4011_v7  ;;  %v1410_v4 = vld [vmem:[%s3988_s5] sm:$0xf] }
 0x247   : > { %1951 = vmatprep.subr.mxu1 %v3748_v6  ;;  %2022 = vmatprep.subr.mxu0 %v3753_v59  ;;  %v1582_v6 = vunpack.c.0.s8 %v1581_v46  ;;  %v4012_v59 = vld [vmem:[#allocation10_spill] sm:$0xff]  ;;  %v1419_v12 = vrot.slane %v1410_v4, %v4013_v11  ;;  %v2138_v46 = vld [vmem:[%s3989_s6 + $0xb0] sm:$0xff] }
 0x248   : > { %1952 = vmatpush1.msra.mxu1 %v3760_v61  ;;  %1985 = vmatprep.mubr.f32.mxu1 %v4009_v3  ;;  %v1415_v51 = vrot.slane %v1410_v4, %v4012_v59  ;;  %v1423_v61 = vrot.slane %v1410_v4, %v1422_v2  ;;  %v1427_v13 = vrot.slane %v1410_v4, %v1426_v54  ;;  %v2136_v2 = vld [vmem:[%s3989_s6 + $0xa0] sm:$0xff]  ;;  %v2135_v54 = vld [vmem:[%s3989_s6 + $0x98] sm:$0xff]  ;;  %v2134_v4 = vld [vmem:[%s3989_s6 + $0x90] sm:$0xff] }
 0x249   : > { %2023 = vmatpush1.msra.mxu0 %v3767_v48  ;;  %2056 = vmatprep.mubr.f32.mxu0 %v4009_v3  ;;  %v1585_v56 = vsub.s32 %v1582_v6, %v4011_v7  ;;  %v2137_v7 = vld [vmem:[%s3989_s6 + $0xa8] sm:$0xff] }
 0x24a   : > { %2160 = vmatprep.subr.mxu1 %v2147_v58  ;;  %v2133_v6 = vld [vmem:[%s3989_s6 + $0x88] sm:$0xff] }
 0x2c7   : > { %v1498_v48 = vpop.f32.mrf.mxu1  ;;  %v1569_v14 = vpop.f32.mrf.mxu0 }
 0x2c8   : > { %v1499_v18 = vadd.f32 %v1498_v48, %v1415_v51  ;;  %v1570_v19 = vadd.f32 %v1569_v14, %v1423_v61  ;;  %v2132_v51 = vld [vmem:[%s3989_s6 + $0x80] sm:$0xff]  ;;  %v2131_v61 = vld [vmem:[%s3989_s6 + $0x78] sm:$0xff] }
 0x2c9   : > { %v1500_v15 = vpop.f32.mrf.mxu1  ;;  %v1571_v17 = vpop.f32.mrf.mxu0  ;;  %v2128_v48 = vld [vmem:[%s3989_s6 + $0x60] sm:$0xff]  ;;  %v2127_v14 = vld [vmem:[%s3989_s6 + $0x58] sm:$0xff] }
 0x2ca   : > { %v1501_v45 = vadd.f32 %v1500_v15, %v1419_v12  ;;  %v1572_v20 = vadd.f32 %v1571_v17, %v1427_v13  ;;  %v2130_v12 = vld [vmem:[%s3989_s6 + $0x70] sm:$0xff]  ;;  %v2129_v13 = vld [vmem:[%s3989_s6 + $0x68] sm:$0xff]  ;;  %v2124_v17 = vld [vmem:[%s3989_s6 + $0x40] sm:$0xff] }
 0x2cb   : > { %v2126_v15 = vld [vmem:[%s3989_s6 + $0x50] sm:$0xff] }
 0x2cc   : > { %v1578_v22 = vcombine.low %v1499_v18, %v1501_v45  ;;  %v1579_v23 = vcombine.low %v1570_v19, %v1572_v20  ;;  %v2123_v18 = vld [vmem:[%s3989_s6 + $0x38] sm:$0xff]  ;;  %v2122_v19 = vld [vmem:[%s3989_s6 + $0x30] sm:$0xff]  ;;  %v2121_v45 = vld [vmem:[%s3989_s6 + $0x28] sm:$0xff] }
 0x2cd   : > { %v2120_v20 = vld [vmem:[%s3989_s6 + $0x20] sm:$0xff] }
 0x2ce   : > { %v1586_v24 = vrot.slane %v1578_v22, %v1585_v56  ;;  %v1593_v9 = vrot.slane %v1579_v23, %v1585_v56  ;;  %v2125_v56 = vld [vmem:[%s3989_s6 + $0x48] sm:$0xff]  ;;  %v2119_v22 = vld [vmem:[%s3989_s6 + $0x18] sm:$0xff]  ;;  %v2118_v23 = vld [vmem:[%s3989_s6 + $0x10] sm:$0xff] }
 0x2d0   : > { %v1594_v25 = vcombine.low %v1586_v24, %v1593_v9  ;;  %v2117_v24 = vld [vmem:[%s3989_s6 + $0x8] sm:$0xff]  ;;  %v2116_v9 = vld [vmem:[%s3989_s6] sm:$0xff] }
 0x2d2   : > { %1596 = vst [vmem:[#allocation3] sm:$0xff] %v1594_v25 }
 0x2d9   : > { %v1597_v39 = vld [vmem:[#allocation3] ss:$2 sm:$0xf] }
 0x2e8   : > { %v1728_v29 = vpop.f32.mrf.mxu1  ;;  %v1799_v30 = vpop.f32.mrf.mxu0 }
 0x2ea   : > { %v1730_v32 = vpop.f32.mrf.mxu1  ;;  %v1801_v33 = vpop.f32.mrf.mxu0 }
 0x2eb   : > { %v1808_v35 = vcombine.low %v1728_v29, %v1730_v32  ;;  %v1809_v40 = vcombine.low %v1799_v30, %v1801_v33 }
 0x2ed   : > { %v1816_v36 = vrot.slane %v1808_v35, %v3852_v31  ;;  %v1823_v38 = vrot.slane %v1809_v40, %v3852_v31 }
 0x2ef   : > { %v1824_v5 = vcombine.low %v1816_v36, %v1823_v38  ;;  %v1856_v36 = vld [vmem:[#allocation3 + $0x1] ss:$2 sm:$0xf] }
 0x2f1   : > { %v1831_v16 = vrot.slane %v1824_v5, %v3852_v31 }
 0x2f3   : > { %v1833_v41 = vadd.f32 %v1831_v16, %v1597_v39 }
 0x2f5   : > { %v2313_v42 = vmul.f32 -1.442695, %v1833_v41  ;;  %v1841_v47 = vrot.slane %v1833_v41, 3 }
 0x2f7   : > { %2344 = vpow2.f32 %v2313_v42 }
 0x304   : > { %v2345_v43 = vpop.eup %2344 }
 0x305   : > { %v1837_v21 = vadd.f32 1.0, %v2345_v43 }
 0x307   : > { %2346 = vrcp.f32 %v1837_v21 }
 0x308   : > { %2348 = vtanh.f32 %v1841_v47 }
 0x314   : > { %v2347_v49 = vpop.eup %2346 }
 0x315   : > { %v1845_v44 = vrot.slane %v2347_v49, 1  ;;  %v2349_v26 = vpop.eup %2348  ;;  %v1851_v55 = vrot.slane %v2347_v49, 2 }
 0x316   : > { %v1848_v50 = vmul.f32 %v2349_v26, %v2347_v49 }
 0x317   : > { %v1847_v52 = vmul.f32 0.0, %v1845_v44 }
 0x319   : > { %v3857_v53 = vadd.f32 %v1848_v50, %v1847_v52 }
 0x31b   : > { %2350 = vtanh.f32 %v3857_v53 }
 0x328   : > { %v2351_v37 = vpop.eup %2350 }
 0x329   : > { %v1853_v57 = vmul.f32 %v2351_v37, %v1851_v55  ;;  %v2148_v37 = vld [vmem:[%s3990_s7] sm:$0x3] }
 0x32a   : > { %v2157_v58 = vrot.slane %v2148_v37, %v4013_v11 }
 0x32b   : > { %1854 = vst [vmem:[#allocation4] sm:$0x1] %v1853_v57  ;;  %1986 = vmatmul.mubr.f32.vlgmr.msra.gmra.mxu1 %v1853_v57  ;;  %2057 = vmatmul.mubr.f32.vlgmr.msra.gmra.mxu0 %v1853_v57  ;;  %v2153_v57 = vrot.slane %v2148_v37, %v4012_v59 }
 0x32c   : > { %2224 = vmatprep.mubr.f32.mxu1 %v4009_v3  ;;  %2161 = vmatpush1.msra.mxu1 %v2146_v60  ;;  %v2141_v3 = vld [vmem:[%s3989_s6 + $0xc8] sm:$0xff] }
 0x32d   : > { %2162 = vmatprep.subr.mxu1 %v2145_v62 }
 0x32e   : > { %2163 = vmatpush1.msra.mxu1 %v2144_v63 }
 0x32f   : > { %2164 = vmatprep.subr.mxu1 %v2143_v0 }
 0x330   : > { %2165 = vmatpush1.msra.mxu1 %v2142_v1  ;;  %v4014_v1 = vld [vmem:[#allocation12_spill] sm:$0xff] }
 0x331   : > { %2166 = vmatprep.subr.mxu1 %v2141_v3 }
 0x332   : > { %2167 = vmatpush1.msra.mxu1 %v2140_v34 }
 0x333   : > { %2168 = vmatprep.subr.mxu1 %v2139_v8  ;;  %v4015_v8 = vld [vmem:[#allocation11_spill] sm:$0xff] }
 0x334   : > { %2169 = vmatpush1.msra.mxu1 %v2138_v46 }
 0x335   : > { %2170 = vmatprep.subr.mxu1 %v2137_v7 }
 0x336   : > { %2171 = vmatpush1.msra.mxu1 %v2136_v2 }
 0x337   : > { %2172 = vmatprep.subr.mxu1 %v2135_v54 }
 0x338   : > { %2173 = vmatpush1.msra.mxu1 %v2134_v4 }
 0x339   : > { %2174 = vmatprep.subr.mxu1 %v2133_v6 }
 0x33a   : > { %2175 = vmatpush1.msra.mxu1 %v2132_v51 }
 0x33b   : > { %2176 = vmatprep.subr.mxu1 %v2131_v61 }
 0x33c   : > { %2177 = vmatpush1.msra.mxu1 %v2130_v12 }
 0x33d   : > { %2178 = vmatprep.subr.mxu1 %v2129_v13 }
 0x33e   : > { %2179 = vmatpush1.msra.mxu1 %v2128_v48 }
 0x33f   : > { %2180 = vmatprep.subr.mxu1 %v2127_v14 }
 0x340   : > { %2181 = vmatpush1.msra.mxu1 %v2126_v15 }
 0x341   : > { %2182 = vmatprep.subr.mxu1 %v2125_v56 }
 0x342   : > { %2183 = vmatpush1.msra.mxu1 %v2124_v17 }
 0x343   : > { %2184 = vmatprep.subr.mxu1 %v2123_v18 }
 0x344   : > { %2185 = vmatpush1.msra.mxu1 %v2122_v19 }
 0x345   : > { %2186 = vmatprep.subr.mxu1 %v2121_v45 }
 0x346   : > { %2187 = vmatpush1.msra.mxu1 %v2120_v20 }
 0x347   : > { %2188 = vmatprep.subr.mxu1 %v2119_v22 }
 0x348   : > { %2189 = vmatpush1.msra.mxu1 %v2118_v23 }
 0x349   : > { %2190 = vmatprep.subr.mxu1 %v2117_v24 }
 0x34a   : > { %2191 = vmatpush1.msra.mxu1 %v2116_v9 }
 0x3eb   : > { %v1987_v25 = vpop.f32.mrf.mxu1  ;;  %v2058_v27 = vpop.f32.mrf.mxu0 }
 0x3ed   : > { %v1989_v28 = vpop.f32.mrf.mxu1  ;;  %v2060_v10 = vpop.f32.mrf.mxu0 }
 0x3ee   : > { %v2067_v29 = vcombine.low %v1987_v25, %v1989_v28  ;;  %v2068_v30 = vcombine.low %v2058_v27, %v2060_v10 }
 0x3f0   : > { %v2075_v32 = vrot.slane %v2067_v29, %v3852_v31  ;;  %v2082_v33 = vrot.slane %v2068_v30, %v3852_v31 }
 0x3f2   : > { %v2083_v35 = vcombine.low %v2075_v32, %v2082_v33 }
 0x3f4   : > { %v2090_v40 = vrot.slane %v2083_v35, %v3852_v31 }
 0x3f6   : > { %v2092_v38 = vadd.f32 %v2090_v40, %v1856_v36 }
 0x3f8   : > { %v2314_v5 = vmul.f32 -1.442695, %v2092_v38  ;;  %v2100_v41 = vrot.slane %v2092_v38, 3 }
 0x3fa   : > { %2352 = vpow2.f32 %v2314_v5 }
 0x407   : > { %v2353_v16 = vpop.eup %2352 }
 0x408   : > { %v2096_v39 = vadd.f32 1.0, %v2353_v16 }
 0x40a   : > { %2354 = vrcp.f32 %v2096_v39 }
 0x40b   : > { %2356 = vtanh.f32 %v2100_v41 }
 0x417   : > { %v2355_v42 = vpop.eup %2354 }
 0x418   : > { %v2104_v43 = vrot.slane %v2355_v42, 1  ;;  %v2357_v21 = vpop.eup %2356  ;;  %v2110_v26 = vrot.slane %v2355_v42, 2 }
 0x419   : > { %v2107_v49 = vmul.f32 %v2357_v21, %v2355_v42 }
 0x41a   : > { %v2106_v47 = vmul.f32 %v2104_v43, %v3857_v53 }
 0x41c   : > { %v2108_v44 = vadd.f32 %v2107_v49, %v2106_v47 }
 0x41e   : > { %2358 = vtanh.f32 %v2108_v44 }
 0x42b   : > { %v2359_v50 = vpop.eup %2358 }
 0x42c   : > { %v2112_v31 = vmul.f32 %v2359_v50, %v2110_v26 }
 0x42e   : > { %2113 = vst [vmem:[#allocation4 + $0x1] sm:$0x1] %v2112_v31 }
 0x435   : > { %v2114_v52 = vld [vmem:[#allocation4] sm:$0x3] }
 0x436   : > { %v2115_v55 = vmax.f32 %v2114_v52, 0.0 }
 0x438   : > { %2225 = vmatmul.mubr.f32.vlgmr.msra.gmra.mxu1 %v2115_v55 }
 0x4f8   : > { %v2226_v60 = vpop.f32.mrf.mxu1 }
 0x4f9   : > { %v2227_v53 = vadd.f32 %v2226_v60, %v2153_v57 }
 0x4fa   : > { %v2228_v62 = vpop.f32.mrf.mxu1 }
 0x4fb   : > { %v2231_v63 = vmax.f32 %v2227_v53, 0.0  ;;  %v2229_v0 = vadd.f32 %v2228_v62, %v2157_v58 }
 0x4fd   : > { %v2233_v3 = vsub.f32 %v2231_v63, %v4014_v1  ;;  %v2232_v34 = vmax.f32 %v2229_v0, 0.0 }
 0x4ff   : > { %v2234_v46 = vsub.f32 %v2232_v34, %v4015_v8  ;;  %v2235_v7 = vmul.f32 %v2233_v3, %v2233_v3 }
 0x501   : > { %v2236_v2 = vmul.f32 %v2234_v46, %v2234_v46  ;;  %v2238_v54 = vsel %vm2237_vm7, %v2235_v7, 0.0 }
 0x503   : > { %v2239_v4 = vsel %vm2237_vm7, %v2236_v2, 0.0 }
 0x504   : > { %v2240_v6 = vadd.f32 %v2239_v4, %v2238_v54 }
 0x506   : > { %2241 = vadd.xlane.f32.xlu0 %v2240_v6 }
 0x58f   : > { %v2242_v59 = vpop.xlane.xlu0 %2241 }
 0x590   : > { %v2243_v51 = vrot.slane %v2242_v59, 4 }
 0x592   : > { %v2244_v11 = vadd.f32 %v2243_v51, %v2242_v59 }
 0x594   : > { %v2245_v61 = vrot.slane %v2244_v11, 2 }
 0x596   : > { %v2246_v12 = vadd.f32 %v2245_v61, %v2244_v11 }
 0x598   : > { %v2247_v13 = vrot.slane %v2246_v12, 1 }
 0x59a   : > { %v2248_v48 = vadd.f32 %v2247_v13, %v2246_v12 }
 0x59c   : > { %2323 = vpush %v2248_v48 }
 0x5cd   : > { %s2324_s9 = spop %2323 }
 0x5ce   : > { %s2252_s10 = smul.f32 0.001953125, %s2324_s9 }
 0x5d0   : > { %v2253_v14 = vstv %s2252_s10 }
 0x5d1   : > { %2255 = vst.msk [vmem:[#allocation5] sm:$0x1] %vm2254_vm8, %v2253_v14 }
 0x5d2 PF: > { %p2329_p5 = scmp.eq.s32.totalorder %s2451_s28, 1  ;;  %s2399_s11 = smov [#allocation5]  }
 0x5d3   : > { %s2263_s12 = sshll.u32 %s2399_s11, 4  ;;  %s2264_s12 = int_to_ptr.vmem [resolvable:$true] %s2263_s12 }
 0x5d4   : > { %s2360_s13 = scalar_lea.vmem %s2264_s12, 16  ;;  %s2366_s14 = scalar_lea.vmem %s2264_s12, 32 }
 0x5d5   : > { %p2361_p6 = scmp.ne.s32.totalorder %s2264_s12, %s2360_s13  ;;  %p2367_p9 = scmp.lt.s32.totalorder %s2264_s12, %s2264_s12 }
 0x5d6   : > { %p2368_p10 = scmp.lt.s32.totalorder %s2366_s14, %s2360_s13 }
 0x5d7   : > { %p2362_p7 = pnand %p2361_p6, %p2329_p5 }
 0x5d8   : > { %p2369_p11 = por %p2368_p10, %p2367_p9 }
 0x5d9   : > { %p2363_p8 = pneg %p2362_p7 }
 0x5db   : > { %p2370_p12 = pnand %p2369_p11, %p2363_p8 }
 0x5dd   : > { %2373 = shalt.err (!%p2370_p12)
}
 0x5de   : > { %2326 = dma.vmem_to_hbm [thread:$0]  (%p2329_p5), %s2264_s12, 16, %s3991_s8, [#allocation6]  }
 0x5df   : > { %2389 = dma.done.wait (%p2329_p5), [#allocation6], 16  }
 0x5e0   : > { %2391 = vsyncadd (%p2329_p5), [#allocation6], 4294967280 }
 0x5e1 PF: > { %s19_s27 = sadd.s32 1, %s2394_s27  }
 0x5e2   : > { %p16_p13 = scmp.ge.s32.totalorder %s19_s27, 4  }
 0x5e4   :  { %18 = sbr.rel (!%p16_p13) target bundleno = 1 (0x1), region = 85 }
 0x5e9   :  { %2276 = vsyncpa [#allocation6], 1 }
 0x5ea   :  { %2278 = vsyncpa [#allocation6 + $0x1], 1 }

</bundles_post_ra>
